<compile_context>
chip_gen: v7x
topology: tpu7x:2x2x1
jax: 0.10.0
libtpu: 0.0.40
codegen_flags: <defaults>
</compile_context>

<pallas_src>
import math
import functools

import jax
import jax.numpy as jnp
from jax import lax
from jax.experimental import pallas as pl
from jax.experimental.pallas import tpu as pltpu

NEG_SLOPE = 0.1


def _leaky(x):
    return jnp.where(x > 0, x, NEG_SLOPE * x)


def _round_up(v, m):
    return (v + m - 1) // m * m


def _mod(a, m):
    if m & (m - 1) == 0:
        return jnp.bitwise_and(a, m - 1)
    return lax.rem(a, m)


def resblock_kernel(x_ref, w1_ref, b1_ref, w2_ref, b2_ref, out_ref, *, H, W, Nb):
    """One grid step: Nb images; channels on sublanes, Nb*H*W flattened on lanes.

    x_ref  : (Nb, Cin, H*W)     input block (channels padded to a multiple of 8)
    w1_ref : (3, Cmid, 3*Cin)   conv1 weights, [kh, cout, kw*Cin + cin]
    b1_ref : (Cmid, 1)
    w2_ref : (3, Cin, 3*Cmid)   conv2 weights, [kh, cout, kw*Cmid + cm]
    b2_ref : (Cin, 1)
    out_ref: (Nb, Cin, H*W)
    """
    HW = H * W
    L = Nb * HW

    # Static boundary masks for the 3x3 halo; position p = img*HW + h*W + w.
    # They double as anti-leak masks between lane-adjacent images: any tap that would
    # read across an image boundary is exactly a tap outside the pad-1 footprint.
    p = lax.broadcasted_iota(jnp.int32, (1, L), 1)
    local = _mod(p, HW)
    col = _mod(local, W)
    not_left = col >= 1                       # tap dw = -1 valid
    not_right = col <= W - 2                  # tap dw = +1 valid
    not_top = local >= W                      # tap dh = -1 valid
    not_bottom = local < (H - 1) * W          # tap dh = +1 valid

    def flatten_batch(ref):
        # (Nb, C, HW) block -> (C, Nb*HW) value; HW is a multiple of 128 in practice,
        # so the lane concatenation is essentially vreg placement.
        if Nb == 1:
            return ref[0]
        return jnp.concatenate([ref[i] for i in range(Nb)], axis=1)

    def conv3x3(src, w_ref, b_ref):
        # 3x3 / stride-1 / pad-1 conv as 3 accumulating matmuls (one per kernel row,
        # K = 3*Cin).  Rolled/masked taps stay in vregs; no im2col scratch.
        acc = None
        for kh in range(3):
            dh = kh - 1
            pieces = []
            for kw in range(3):
                dw = kw - 1
                d = dh * W + dw
                piece = src if d == 0 else pltpu.roll(src, (-d) % L, 1)
                m = None
                if dw == -1:
                    m = not_left
                elif dw == 1:
                    m = not_right
                if dh == -1:
                    m = not_top if m is None else (m & not_top)
                elif dh == 1:
                    m = not_bottom if m is None else (m & not_bottom)
                if m is not None:
                    piece = jnp.where(m, piece, 0.0)
                pieces.append(piece)
            group = jnp.concatenate(pieces, axis=0)            # (3*Cin, L), in vregs
            wg = w_ref[kh]                                     # (Cout, 3*Cin)
            part = jnp.dot(wg, group.astype(wg.dtype),
                           preferred_element_type=jnp.float32)
            acc = part if acc is None else acc + part
        return acc + b_ref[...]

    a = _leaky(flatten_batch(x_ref).astype(jnp.float32))        # (Cin, L)
    h1 = _leaky(conv3x3(a, w1_ref, b1_ref))                     # (Cmid, L)
    y = conv3x3(h1, w2_ref, b2_ref)                             # (Cin, L)

    # Residual: re-read x from the VMEM-resident input block at store time (x is not
    # carried live across both convs).  Dropout == identity (eval mode).
    for i in range(Nb):
        out_ref[i] = (y[:, i * HW:(i + 1) * HW]
                      + x_ref[i].astype(jnp.float32)).astype(out_ref.dtype)


def _pick_images_per_step(n, per_image_bytes):
    """Largest useful divisor of n: keeps >=2 grid steps when n>=2 (both v7x TCs busy),
    keeps the block under a VMEM-friendly cap, and prefers the smallest block that still
    reaches ~512 KiB per step for DMA efficiency."""
    target = 512 * 1024
    cap = 6 * 1024 * 1024
    allowed = [d for d in range(1, n + 1)
               if n % d == 0 and (n < 2 or n // d >= 2) and d * per_image_bytes <= cap]
    if not allowed:
        return 1
    big = [d for d in allowed if d * per_image_bytes >= target]
    return min(big) if big else max(allowed)


def resblock_bottleneck(x_nchw, w1, b1, w2, b2, *, use_bf16=None):
    """x_nchw: (N, C, H, W); w1: (3,3,C,Cmid) HWIO; b1: (Cmid,); w2: (3,3,Cmid,C); b2: (C,)."""
    N, C, H, W = x_nchw.shape
    Cmid = w1.shape[-1]
    HW = H * W

    # Pad channel counts to multiples of 8 (sublane tile) with zero weights / zero inputs.
    Cp = _round_up(C, 8)
    Cm = _round_up(Cmid, 8)

    # bf16 weight slabs (f32 accumulation) only when wide enough to be MXU-bound.
    if use_bf16 is None:
        use_bf16 = min(C, Cmid) >= 64
    wdtype = jnp.bfloat16 if use_bf16 else jnp.float32

    x_flat = x_nchw.reshape(N, C, HW)                       # free reshape, channels-first
    if Cp != C:
        x_flat = jnp.pad(x_flat, ((0, 0), (0, Cp - C), (0, 0)))

    # (kh, kw, cin, cout) -> (kh, cout, kw*cin_pad + cin), zero-padded channels.
    w1p = jnp.pad(w1, ((0, 0), (0, 0), (0, Cp - C), (0, Cm - Cmid)))
    w1k = jnp.transpose(w1p, (0, 3, 1, 2)).reshape(3, Cm, 3 * Cp).astype(wdtype)
    w2p = jnp.pad(w2, ((0, 0), (0, 0), (0, Cm - Cmid), (0, Cp - C)))
    w2k = jnp.transpose(w2p, (0, 3, 1, 2)).reshape(3, Cp, 3 * Cm).astype(wdtype)
    b1p = jnp.pad(b1, (0, Cm - Cmid)).reshape(Cm, 1).astype(jnp.float32)
    b2p = jnp.pad(b2, (0, Cp - C)).reshape(Cp, 1).astype(jnp.float32)

    itemsize = x_flat.dtype.itemsize
    Nb = _pick_images_per_step(N, Cp * HW * itemsize)
    steps = N // Nb

    kernel = functools.partial(resblock_kernel, H=H, W=W, Nb=Nb)

    flops = 2 * N * HW * 9 * 2 * Cp * Cm
    weight_bytes = (w1k.size + w2k.size) * w1k.dtype.itemsize + (b1p.size + b2p.size) * 4
    cost = pl.CostEstimate(flops=flops, transcendentals=0,
                           bytes_accessed=int(2 * x_flat.size * itemsize + weight_bytes))

    block_bytes = Nb * Cp * HW * itemsize
    # I/O double buffers + resident weights + in-kernel working set (taps + activations).
    vmem_est = 4 * block_bytes + 2 * weight_bytes + 10 * block_bytes
    compiler_kwargs = dict(dimension_semantics=("parallel",))
    if vmem_est > 30 * 1024 * 1024:
        compiler_kwargs["vmem_limit_bytes"] = int(min(vmem_est * 3 // 2, 60 * 1024 * 1024))

    def run(single_buffer_weights):
        def wspec(shape):
            if single_buffer_weights:
                # Resident weights/biases: constant index_map, single VMEM buffer.
                return pl.BlockSpec(shape, lambda g: (0,) * len(shape),
                                    pipeline_mode=pl.Buffered(1))
            return pl.BlockSpec(shape, lambda g: (0,) * len(shape))

        out = pl.pallas_call(
            kernel,
            out_shape=jax.ShapeDtypeStruct((N, Cp, HW), x_nchw.dtype),
            grid=(steps,),
            in_specs=[
                pl.BlockSpec((Nb, Cp, HW), lambda g: (g, 0, 0)),
                wspec((3, Cm, 3 * Cp)),
                wspec((Cm, 1)),
                wspec((3, Cp, 3 * Cm)),
                wspec((Cp, 1)),
            ],
            out_specs=pl.BlockSpec((Nb, Cp, HW), lambda g: (g, 0, 0)),
            compiler_params=pltpu.CompilerParams(**compiler_kwargs),
            cost_estimate=cost,
        )(x_flat, w1k, b1p, w2k, b2p)
        return jax.block_until_ready(out)

    try:
        out = run(True)
    except Exception:
        # pl.Buffered(1) not supported by this Pallas version -> default double buffering.
        out = run(False)

    return out[:, :C, :].reshape(N, C, H, W)


if __name__ == "__main__":
    key = jax.random.PRNGKey(0)
    N, fin, H, W = 2, 4, 16, 16
    Cmid = fin // 2

    kx, k1, k2 = jax.random.split(key, 3)
    x = jax.random.normal(kx, (N, fin, H, W), jnp.float32)

    # Deterministic init matching makeConvLayer: weight ~ N(0, sqrt(2/(k*k*fan_in))), bias = 0
    std1 = math.sqrt(2.0 / (3 * 3 * fin))
    std2 = math.sqrt(2.0 / (3 * 3 * Cmid))
    w1 = std1 * jax.random.normal(k1, (3, 3, fin, Cmid), jnp.float32)   # HWIO
    b1 = jnp.zeros((Cmid,), jnp.float32)
    w2 = std2 * jax.random.normal(k2, (3, 3, Cmid, fin), jnp.float32)   # HWIO
    b2 = jnp.zeros((fin,), jnp.float32)

    out = jax.block_until_ready(resblock_bottleneck(x, w1, b1, w2, b2))

    # pure-JAX reference (eval-mode dropout == identity)
    def ref(xn_nchw):
        xn = jnp.transpose(xn_nchw, (0, 2, 3, 1))
        dn = ("NHWC", "HWIO", "NHWC")
        a = jax.nn.leaky_relu(xn, NEG_SLOPE)
        y = lax.conv_general_dilated(a, w1, (1, 1), [(1, 1), (1, 1)],
                                     dimension_numbers=dn) + b1
        y = jax.nn.leaky_relu(y, NEG_SLOPE)
        y = lax.conv_general_dilated(y, w2, (1, 1), [(1, 1), (1, 1)],
                                     dimension_numbers=dn) + b2
        return jnp.transpose(y + xn, (0, 3, 1, 2))

    expected = ref(x)
    err = float(jnp.max(jnp.abs(out - expected)))
    assert out.shape == (N, fin, H, W)
    assert jnp.allclose(out, expected, atol=1e-4, rtol=1e-4), f"max abs err {err}"
    print("KERNEL_OK")
</pallas_src>

<mosaic_0001>
module attributes {stable_mosaic.version = 11 : i64} {
  func.func @resblock_kernel(%arg0: i32, %arg1: memref<1x8x256xf32, #tpu.memory_space<vmem>>, %arg2: memref<3x8x24xf32, #tpu.memory_space<vmem>>, %arg3: memref<8x1xf32, #tpu.memory_space<vmem>>, %arg4: memref<3x8x24xf32, #tpu.memory_space<vmem>>, %arg5: memref<8x1xf32, #tpu.memory_space<vmem>>, %arg6: memref<1x8x256xf32, #tpu.memory_space<vmem>>) attributes {dimension_semantics = [#tpu.dimension_semantics<parallel>], iteration_bounds = array<i64: 2>, scalar_prefetch = 0 : i64, scratch_operands = 0 : i64, tpu.core_type = #tpu.core_type<tc>, window_params = [{transform_indices = @transform_0, window_bounds = array<i64: 1, 8, 256>}, {pipeline_mode = #tpu.pipeline_mode<synchronous>, transform_indices = @transform_1, window_bounds = array<i64: 3, 8, 24>}, {pipeline_mode = #tpu.pipeline_mode<synchronous>, transform_indices = @transform_2, window_bounds = array<i64: 8, 1>}, {pipeline_mode = #tpu.pipeline_mode<synchronous>, transform_indices = @transform_3, window_bounds = array<i64: 3, 8, 24>}, {pipeline_mode = #tpu.pipeline_mode<synchronous>, transform_indices = @transform_4, window_bounds = array<i64: 8, 1>}, {transform_indices = @transform_5, window_bounds = array<i64: 1, 8, 256>}]} {
    %0 = tpu.iota {dimensions = array<i32: 1>} : vector<1x256xi32>
    %c255_i32 = arith.constant 255 : i32
    %1 = vector.broadcast %c255_i32 : i32 to vector<1x256xi32>
    %2 = arith.andi %0, %1 : vector<1x256xi32>
    %c15_i32 = arith.constant 15 : i32
    %3 = vector.broadcast %c15_i32 : i32 to vector<1x256xi32>
    %4 = arith.andi %2, %3 : vector<1x256xi32>
    %c1_i32 = arith.constant 1 : i32
    %5 = vector.broadcast %c1_i32 : i32 to vector<1x256xi32>
    %6 = arith.cmpi sge, %4, %5 : vector<1x256xi32>
    %c14_i32 = arith.constant 14 : i32
    %7 = vector.broadcast %c14_i32 : i32 to vector<1x256xi32>
    %8 = arith.cmpi sle, %4, %7 : vector<1x256xi32>
    %c16_i32 = arith.constant 16 : i32
    %9 = vector.broadcast %c16_i32 : i32 to vector<1x256xi32>
    %10 = arith.cmpi sge, %2, %9 : vector<1x256xi32>
    %c240_i32 = arith.constant 240 : i32
    %11 = vector.broadcast %c240_i32 : i32 to vector<1x256xi32>
    %12 = arith.cmpi slt, %2, %11 : vector<1x256xi32>
    %c0 = arith.constant 0 : index
    %c0_0 = arith.constant 0 : index
    %c0_1 = arith.constant 0 : index
    %13 = vector.load %arg1[%c0, %c0_0, %c0_1] : memref<1x8x256xf32, #tpu.memory_space<vmem>>, vector<1x8x256xf32>
    %14 = vector.shape_cast %13 : vector<1x8x256xf32> to vector<8x256xf32>
    %cst = arith.constant 0.000000e+00 : f32
    %15 = vector.broadcast %cst : f32 to vector<8x256xf32>
    %16 = arith.cmpf ogt, %14, %15 : vector<8x256xf32>
    %cst_2 = arith.constant 1.000000e-01 : f32
    %17 = vector.broadcast %cst_2 : f32 to vector<8x256xf32>
    %18 = arith.mulf %17, %14 : vector<8x256xf32>
    %19 = arith.select %16, %14, %18 : vector<8x256xi1>, vector<8x256xf32>
    %c17_i32 = arith.constant 17 : i32
    %20 = tpu.dynamic_rotate %19 by %c17_i32 dim 1 : vector<8x256xf32>, i32 -> vector<8x256xf32>
    %21 = arith.andi %6, %10 : vector<1x256xi1>
    %cst_3 = arith.constant 0.000000e+00 : f32
    %22 = vector.shape_cast %21 : vector<1x256xi1> to vector<1x256xi1>
    %23 = vector.broadcast %22 : vector<1x256xi1> to vector<8x256xi1>
    %24 = vector.broadcast %cst_3 : f32 to vector<8x256xf32>
    %25 = arith.select %23, %20, %24 : vector<8x256xi1>, vector<8x256xf32>
    %c16_i32_4 = arith.constant 16 : i32
    %26 = tpu.dynamic_rotate %19 by %c16_i32_4 dim 1 : vector<8x256xf32>, i32 -> vector<8x256xf32>
    %cst_5 = arith.constant 0.000000e+00 : f32
    %27 = vector.shape_cast %10 : vector<1x256xi1> to vector<1x256xi1>
    %28 = vector.broadcast %27 : vector<1x256xi1> to vector<8x256xi1>
    %29 = vector.broadcast %cst_5 : f32 to vector<8x256xf32>
    %30 = arith.select %28, %26, %29 : vector<8x256xi1>, vector<8x256xf32>
    %c15_i32_6 = arith.constant 15 : i32
    %31 = tpu.dynamic_rotate %19 by %c15_i32_6 dim 1 : vector<8x256xf32>, i32 -> vector<8x256xf32>
    %32 = arith.andi %8, %10 : vector<1x256xi1>
    %cst_7 = arith.constant 0.000000e+00 : f32
    %33 = vector.shape_cast %32 : vector<1x256xi1> to vector<1x256xi1>
    %34 = vector.broadcast %33 : vector<1x256xi1> to vector<8x256xi1>
    %35 = vector.broadcast %cst_7 : f32 to vector<8x256xf32>
    %36 = arith.select %34, %31, %35 : vector<8x256xi1>, vector<8x256xf32>
    %37 = tpu.concatenate %25, %30, %36 in 0 : vector<8x256xf32>, vector<8x256xf32>, vector<8x256xf32> -> vector<24x256xf32>
    %c0_8 = arith.constant 0 : index
    %c0_9 = arith.constant 0 : index
    %c0_10 = arith.constant 0 : index
    %38 = vector.load %arg2[%c0_8, %c0_9, %c0_10] : memref<3x8x24xf32, #tpu.memory_space<vmem>>, vector<1x8x24xf32>
    %39 = vector.shape_cast %38 : vector<1x8x24xf32> to vector<8x24xf32>
    %cst_11 = arith.constant dense<0.000000e+00> : vector<8x256xf32>
    %40 = tpu.matmul %39, %37, %cst_11 {dimension_numbers = #tpu.dot_dimension_numbers<[1], [0], [0], [1], [0, 0, 1, 1], [], []>} : vector<8x24xf32>, vector<24x256xf32>, vector<8x256xf32> -> vector<8x256xf32>
    %c1_i32_12 = arith.constant 1 : i32
    %41 = tpu.dynamic_rotate %19 by %c1_i32_12 dim 1 : vector<8x256xf32>, i32 -> vector<8x256xf32>
    %cst_13 = arith.constant 0.000000e+00 : f32
    %42 = vector.shape_cast %6 : vector<1x256xi1> to vector<1x256xi1>
    %43 = vector.broadcast %42 : vector<1x256xi1> to vector<8x256xi1>
    %44 = vector.broadcast %cst_13 : f32 to vector<8x256xf32>
    %45 = arith.select %43, %41, %44 : vector<8x256xi1>, vector<8x256xf32>
    %c255_i32_14 = arith.constant 255 : i32
    %46 = tpu.dynamic_rotate %19 by %c255_i32_14 dim 1 : vector<8x256xf32>, i32 -> vector<8x256xf32>
    %cst_15 = arith.constant 0.000000e+00 : f32
    %47 = vector.shape_cast %8 : vector<1x256xi1> to vector<1x256xi1>
    %48 = vector.broadcast %47 : vector<1x256xi1> to vector<8x256xi1>
    %49 = vector.broadcast %cst_15 : f32 to vector<8x256xf32>
    %50 = arith.select %48, %46, %49 : vector<8x256xi1>, vector<8x256xf32>
    %51 = tpu.concatenate %45, %19, %50 in 0 : vector<8x256xf32>, vector<8x256xf32>, vector<8x256xf32> -> vector<24x256xf32>
    %c1 = arith.constant 1 : index
    %c0_16 = arith.constant 0 : index
    %c0_17 = arith.constant 0 : index
    %52 = vector.load %arg2[%c1, %c0_16, %c0_17] : memref<3x8x24xf32, #tpu.memory_space<vmem>>, vector<1x8x24xf32>
    %53 = vector.shape_cast %52 : vector<1x8x24xf32> to vector<8x24xf32>
    %cst_18 = arith.constant dense<0.000000e+00> : vector<8x256xf32>
    %54 = tpu.matmul %53, %51, %cst_18 {dimension_numbers = #tpu.dot_dimension_numbers<[1], [0], [0], [1], [0, 0, 1, 1], [], []>} : vector<8x24xf32>, vector<24x256xf32>, vector<8x256xf32> -> vector<8x256xf32>
    %55 = arith.addf %40, %54 : vector<8x256xf32>
    %c241_i32 = arith.constant 241 : i32
    %56 = tpu.dynamic_rotate %19 by %c241_i32 dim 1 : vector<8x256xf32>, i32 -> vector<8x256xf32>
    %57 = arith.andi %6, %12 : vector<1x256xi1>
    %cst_19 = arith.constant 0.000000e+00 : f32
    %58 = vector.shape_cast %57 : vector<1x256xi1> to vector<1x256xi1>
    %59 = vector.broadcast %58 : vector<1x256xi1> to vector<8x256xi1>
    %60 = vector.broadcast %cst_19 : f32 to vector<8x256xf32>
    %61 = arith.select %59, %56, %60 : vector<8x256xi1>, vector<8x256xf32>
    %c240_i32_20 = arith.constant 240 : i32
    %62 = tpu.dynamic_rotate %19 by %c240_i32_20 dim 1 : vector<8x256xf32>, i32 -> vector<8x256xf32>
    %cst_21 = arith.constant 0.000000e+00 : f32
    %63 = vector.shape_cast %12 : vector<1x256xi1> to vector<1x256xi1>
    %64 = vector.broadcast %63 : vector<1x256xi1> to vector<8x256xi1>
    %65 = vector.broadcast %cst_21 : f32 to vector<8x256xf32>
    %66 = arith.select %64, %62, %65 : vector<8x256xi1>, vector<8x256xf32>
    %c239_i32 = arith.constant 239 : i32
    %67 = tpu.dynamic_rotate %19 by %c239_i32 dim 1 : vector<8x256xf32>, i32 -> vector<8x256xf32>
    %68 = arith.andi %8, %12 : vector<1x256xi1>
    %cst_22 = arith.constant 0.000000e+00 : f32
    %69 = vector.shape_cast %68 : vector<1x256xi1> to vector<1x256xi1>
    %70 = vector.broadcast %69 : vector<1x256xi1> to vector<8x256xi1>
    %71 = vector.broadcast %cst_22 : f32 to vector<8x256xf32>
    %72 = arith.select %70, %67, %71 : vector<8x256xi1>, vector<8x256xf32>
    %73 = tpu.concatenate %61, %66, %72 in 0 : vector<8x256xf32>, vector<8x256xf32>, vector<8x256xf32> -> vector<24x256xf32>
    %c2 = arith.constant 2 : index
    %c0_23 = arith.constant 0 : index
    %c0_24 = arith.constant 0 : index
    %74 = vector.load %arg2[%c2, %c0_23, %c0_24] : memref<3x8x24xf32, #tpu.memory_space<vmem>>, vector<1x8x24xf32>
    %75 = vector.shape_cast %74 : vector<1x8x24xf32> to vector<8x24xf32>
    %cst_25 = arith.constant dense<0.000000e+00> : vector<8x256xf32>
    %76 = tpu.matmul %75, %73, %cst_25 {dimension_numbers = #tpu.dot_dimension_numbers<[1], [0], [0], [1], [0, 0, 1, 1], [], []>} : vector<8x24xf32>, vector<24x256xf32>, vector<8x256xf32> -> vector<8x256xf32>
    %77 = arith.addf %55, %76 : vector<8x256xf32>
    %c0_26 = arith.constant 0 : index
    %c0_27 = arith.constant 0 : index
    %78 = vector.load %arg3[%c0_26, %c0_27] : memref<8x1xf32, #tpu.memory_space<vmem>>, vector<8x1xf32>
    %79 = vector.broadcast %78 : vector<8x1xf32> to vector<8x256xf32>
    %80 = arith.addf %77, %79 : vector<8x256xf32>
    %cst_28 = arith.constant 0.000000e+00 : f32
    %81 = vector.broadcast %cst_28 : f32 to vector<8x256xf32>
    %82 = arith.cmpf ogt, %80, %81 : vector<8x256xf32>
    %cst_29 = arith.constant 1.000000e-01 : f32
    %83 = vector.broadcast %cst_29 : f32 to vector<8x256xf32>
    %84 = arith.mulf %83, %80 : vector<8x256xf32>
    %85 = arith.select %82, %80, %84 : vector<8x256xi1>, vector<8x256xf32>
    %c17_i32_30 = arith.constant 17 : i32
    %86 = tpu.dynamic_rotate %85 by %c17_i32_30 dim 1 : vector<8x256xf32>, i32 -> vector<8x256xf32>
    %87 = arith.andi %6, %10 : vector<1x256xi1>
    %cst_31 = arith.constant 0.000000e+00 : f32
    %88 = vector.shape_cast %87 : vector<1x256xi1> to vector<1x256xi1>
    %89 = vector.broadcast %88 : vector<1x256xi1> to vector<8x256xi1>
    %90 = vector.broadcast %cst_31 : f32 to vector<8x256xf32>
    %91 = arith.select %89, %86, %90 : vector<8x256xi1>, vector<8x256xf32>
    %c16_i32_32 = arith.constant 16 : i32
    %92 = tpu.dynamic_rotate %85 by %c16_i32_32 dim 1 : vector<8x256xf32>, i32 -> vector<8x256xf32>
    %cst_33 = arith.constant 0.000000e+00 : f32
    %93 = vector.shape_cast %10 : vector<1x256xi1> to vector<1x256xi1>
    %94 = vector.broadcast %93 : vector<1x256xi1> to vector<8x256xi1>
    %95 = vector.broadcast %cst_33 : f32 to vector<8x256xf32>
    %96 = arith.select %94, %92, %95 : vector<8x256xi1>, vector<8x256xf32>
    %c15_i32_34 = arith.constant 15 : i32
    %97 = tpu.dynamic_rotate %85 by %c15_i32_34 dim 1 : vector<8x256xf32>, i32 -> vector<8x256xf32>
    %98 = arith.andi %8, %10 : vector<1x256xi1>
    %cst_35 = arith.constant 0.000000e+00 : f32
    %99 = vector.shape_cast %98 : vector<1x256xi1> to vector<1x256xi1>
    %100 = vector.broadcast %99 : vector<1x256xi1> to vector<8x256xi1>
    %101 = vector.broadcast %cst_35 : f32 to vector<8x256xf32>
    %102 = arith.select %100, %97, %101 : vector<8x256xi1>, vector<8x256xf32>
    %103 = tpu.concatenate %91, %96, %102 in 0 : vector<8x256xf32>, vector<8x256xf32>, vector<8x256xf32> -> vector<24x256xf32>
    %c0_36 = arith.constant 0 : index
    %c0_37 = arith.constant 0 : index
    %c0_38 = arith.constant 0 : index
    %104 = vector.load %arg4[%c0_36, %c0_37, %c0_38] : memref<3x8x24xf32, #tpu.memory_space<vmem>>, vector<1x8x24xf32>
    %105 = vector.shape_cast %104 : vector<1x8x24xf32> to vector<8x24xf32>
    %cst_39 = arith.constant dense<0.000000e+00> : vector<8x256xf32>
    %106 = tpu.matmul %105, %103, %cst_39 {dimension_numbers = #tpu.dot_dimension_numbers<[1], [0], [0], [1], [0, 0, 1, 1], [], []>} : vector<8x24xf32>, vector<24x256xf32>, vector<8x256xf32> -> vector<8x256xf32>
    %c1_i32_40 = arith.constant 1 : i32
    %107 = tpu.dynamic_rotate %85 by %c1_i32_40 dim 1 : vector<8x256xf32>, i32 -> vector<8x256xf32>
    %cst_41 = arith.constant 0.000000e+00 : f32
    %108 = vector.shape_cast %6 : vector<1x256xi1> to vector<1x256xi1>
    %109 = vector.broadcast %108 : vector<1x256xi1> to vector<8x256xi1>
    %110 = vector.broadcast %cst_41 : f32 to vector<8x256xf32>
    %111 = arith.select %109, %107, %110 : vector<8x256xi1>, vector<8x256xf32>
    %c255_i32_42 = arith.constant 255 : i32
    %112 = tpu.dynamic_rotate %85 by %c255_i32_42 dim 1 : vector<8x256xf32>, i32 -> vector<8x256xf32>
    %cst_43 = arith.constant 0.000000e+00 : f32
    %113 = vector.shape_cast %8 : vector<1x256xi1> to vector<1x256xi1>
    %114 = vector.broadcast %113 : vector<1x256xi1> to vector<8x256xi1>
    %115 = vector.broadcast %cst_43 : f32 to vector<8x256xf32>
    %116 = arith.select %114, %112, %115 : vector<8x256xi1>, vector<8x256xf32>
    %117 = tpu.concatenate %111, %85, %116 in 0 : vector<8x256xf32>, vector<8x256xf32>, vector<8x256xf32> -> vector<24x256xf32>
    %c1_44 = arith.constant 1 : index
    %c0_45 = arith.constant 0 : index
    %c0_46 = arith.constant 0 : index
    %118 = vector.load %arg4[%c1_44, %c0_45, %c0_46] : memref<3x8x24xf32, #tpu.memory_space<vmem>>, vector<1x8x24xf32>
    %119 = vector.shape_cast %118 : vector<1x8x24xf32> to vector<8x24xf32>
    %cst_47 = arith.constant dense<0.000000e+00> : vector<8x256xf32>
    %120 = tpu.matmul %119, %117, %cst_47 {dimension_numbers = #tpu.dot_dimension_numbers<[1], [0], [0], [1], [0, 0, 1, 1], [], []>} : vector<8x24xf32>, vector<24x256xf32>, vector<8x256xf32> -> vector<8x256xf32>
    %121 = arith.addf %106, %120 : vector<8x256xf32>
    %c241_i32_48 = arith.constant 241 : i32
    %122 = tpu.dynamic_rotate %85 by %c241_i32_48 dim 1 : vector<8x256xf32>, i32 -> vector<8x256xf32>
    %123 = arith.andi %6, %12 : vector<1x256xi1>
    %cst_49 = arith.constant 0.000000e+00 : f32
    %124 = vector.shape_cast %123 : vector<1x256xi1> to vector<1x256xi1>
    %125 = vector.broadcast %124 : vector<1x256xi1> to vector<8x256xi1>
    %126 = vector.broadcast %cst_49 : f32 to vector<8x256xf32>
    %127 = arith.select %125, %122, %126 : vector<8x256xi1>, vector<8x256xf32>
    %c240_i32_50 = arith.constant 240 : i32
    %128 = tpu.dynamic_rotate %85 by %c240_i32_50 dim 1 : vector<8x256xf32>, i32 -> vector<8x256xf32>
    %cst_51 = arith.constant 0.000000e+00 : f32
    %129 = vector.shape_cast %12 : vector<1x256xi1> to vector<1x256xi1>
    %130 = vector.broadcast %129 : vector<1x256xi1> to vector<8x256xi1>
    %131 = vector.broadcast %cst_51 : f32 to vector<8x256xf32>
    %132 = arith.select %130, %128, %131 : vector<8x256xi1>, vector<8x256xf32>
    %c239_i32_52 = arith.constant 239 : i32
    %133 = tpu.dynamic_rotate %85 by %c239_i32_52 dim 1 : vector<8x256xf32>, i32 -> vector<8x256xf32>
    %134 = arith.andi %8, %12 : vector<1x256xi1>
    %cst_53 = arith.constant 0.000000e+00 : f32
    %135 = vector.shape_cast %134 : vector<1x256xi1> to vector<1x256xi1>
    %136 = vector.broadcast %135 : vector<1x256xi1> to vector<8x256xi1>
    %137 = vector.broadcast %cst_53 : f32 to vector<8x256xf32>
    %138 = arith.select %136, %133, %137 : vector<8x256xi1>, vector<8x256xf32>
    %139 = tpu.concatenate %127, %132, %138 in 0 : vector<8x256xf32>, vector<8x256xf32>, vector<8x256xf32> -> vector<24x256xf32>
    %c2_54 = arith.constant 2 : index
    %c0_55 = arith.constant 0 : index
    %c0_56 = arith.constant 0 : index
    %140 = vector.load %arg4[%c2_54, %c0_55, %c0_56] : memref<3x8x24xf32, #tpu.memory_space<vmem>>, vector<1x8x24xf32>
    %141 = vector.shape_cast %140 : vector<1x8x24xf32> to vector<8x24xf32>
    %cst_57 = arith.constant dense<0.000000e+00> : vector<8x256xf32>
    %142 = tpu.matmul %141, %139, %cst_57 {dimension_numbers = #tpu.dot_dimension_numbers<[1], [0], [0], [1], [0, 0, 1, 1], [], []>} : vector<8x24xf32>, vector<24x256xf32>, vector<8x256xf32> -> vector<8x256xf32>
    %143 = arith.addf %121, %142 : vector<8x256xf32>
    %c0_58 = arith.constant 0 : index
    %c0_59 = arith.constant 0 : index
    %144 = vector.load %arg5[%c0_58, %c0_59] : memref<8x1xf32, #tpu.memory_space<vmem>>, vector<8x1xf32>
    %145 = vector.broadcast %144 : vector<8x1xf32> to vector<8x256xf32>
    %146 = arith.addf %143, %145 : vector<8x256xf32>
    %c0_60 = arith.constant 0 : index
    %c0_61 = arith.constant 0 : index
    %c0_62 = arith.constant 0 : index
    %147 = vector.load %arg1[%c0_60, %c0_61, %c0_62] : memref<1x8x256xf32, #tpu.memory_space<vmem>>, vector<1x8x256xf32>
    %148 = vector.shape_cast %147 : vector<1x8x256xf32> to vector<8x256xf32>
    %149 = arith.addf %146, %148 : vector<8x256xf32>
    %c0_63 = arith.constant 0 : index
    %c0_64 = arith.constant 0 : index
    %c0_65 = arith.constant 0 : index
    %150 = vector.load %arg6[%c0_63, %c0_64, %c0_65] : memref<1x8x256xf32, #tpu.memory_space<vmem>>, vector<1x8x256xf32>
    %151 = vector.shape_cast %150 : vector<1x8x256xf32> to vector<8x256xf32>
    %152 = vector.shape_cast %149 : vector<8x256xf32> to vector<1x8x256xf32>
    tpu.vector_store %arg6[%c0_63, %c0_64, %c0_65], %152 {strides = array<i32>} : memref<1x8x256xf32, #tpu.memory_space<vmem>>, vector<1x8x256xf32>,
    return
  }
  func.func @transform_0(%arg0: i32) -> (i32, i32, i32) {
    %c0_i32 = arith.constant 0 : i32
    %c0_i32_0 = arith.constant 0 : i32
    %c0_i32_1 = arith.constant 0 : i32
    return %arg0, %c0_i32, %c0_i32_0 : i32, i32, i32
  }
  func.func @transform_1(%arg0: i32) -> (i32, i32, i32) {
    %c0_i32 = arith.constant 0 : i32
    %c0_i32_0 = arith.constant 0 : i32
    %c0_i32_1 = arith.constant 0 : i32
    %c0_i32_2 = arith.constant 0 : i32
    return %c0_i32, %c0_i32_0, %c0_i32_1 : i32, i32, i32
  }
  func.func @transform_2(%arg0: i32) -> (i32, i32) {
    %c0_i32 = arith.constant 0 : i32
    %c0_i32_0 = arith.constant 0 : i32
    %c0_i32_1 = arith.constant 0 : i32
    return %c0_i32, %c0_i32_0 : i32, i32
  }
  func.func @transform_3(%arg0: i32) -> (i32, i32, i32) {
    %c0_i32 = arith.constant 0 : i32
    %c0_i32_0 = arith.constant 0 : i32
    %c0_i32_1 = arith.constant 0 : i32
    %c0_i32_2 = arith.constant 0 : i32
    return %c0_i32, %c0_i32_0, %c0_i32_1 : i32, i32, i32
  }
  func.func @transform_4(%arg0: i32) -> (i32, i32) {
    %c0_i32 = arith.constant 0 : i32
    %c0_i32_0 = arith.constant 0 : i32
    %c0_i32_1 = arith.constant 0 : i32
    return %c0_i32, %c0_i32_0 : i32, i32
  }
  func.func @transform_5(%arg0: i32) -> (i32, i32, i32) {
    %c0_i32 = arith.constant 0 : i32
    %c0_i32_0 = arith.constant 0 : i32
    %c0_i32_1 = arith.constant 0 : i32
    return %arg0, %c0_i32, %c0_i32_0 : i32, i32, i32
  }
}

module attributes {stable_mosaic.version = 11 : i64} {
  func.func @resblock_kernel(%arg0: i32, %arg1: memref<1x8x256xf32, #tpu.memory_space<vmem>>, %arg2: memref<3x8x24xf32, #tpu.memory_space<vmem>>, %arg3: memref<8x1xf32, #tpu.memory_space<vmem>>, %arg4: memref<3x8x24xf32, #tpu.memory_space<vmem>>, %arg5: memref<8x1xf32, #tpu.memory_space<vmem>>, %arg6: memref<1x8x256xf32, #tpu.memory_space<vmem>>) attributes {dimension_semantics = [#tpu.dimension_semantics<parallel>], iteration_bounds = array<i64: 2>, scalar_prefetch = 0 : i64, scratch_operands = 0 : i64, tpu.core_type = #tpu.core_type<tc>, window_params = [{transform_indices = @transform_0, window_bounds = array<i64: 1, 8, 256>}, {pipeline_mode = #tpu.pipeline_mode<synchronous>, transform_indices = @transform_1, window_bounds = array<i64: 3, 8, 24>}, {pipeline_mode = #tpu.pipeline_mode<synchronous>, transform_indices = @transform_2, window_bounds = array<i64: 8, 1>}, {pipeline_mode = #tpu.pipeline_mode<synchronous>, transform_indices = @transform_3, window_bounds = array<i64: 3, 8, 24>}, {pipeline_mode = #tpu.pipeline_mode<synchronous>, transform_indices = @transform_4, window_bounds = array<i64: 8, 1>}, {transform_indices = @transform_5, window_bounds = array<i64: 1, 8, 256>}]} {
    %0 = tpu.iota {dimensions = array<i32: 1>} : vector<1x256xi32>
    %c255_i32 = arith.constant 255 : i32
    %1 = vector.broadcast %c255_i32 : i32 to vector<1x256xi32>
    %2 = arith.andi %0, %1 : vector<1x256xi32>
    %c15_i32 = arith.constant 15 : i32
    %3 = vector.broadcast %c15_i32 : i32 to vector<1x256xi32>
    %4 = arith.andi %2, %3 : vector<1x256xi32>
    %c1_i32 = arith.constant 1 : i32
    %5 = vector.broadcast %c1_i32 : i32 to vector<1x256xi32>
    %6 = arith.cmpi sge, %4, %5 : vector<1x256xi32>
    %c14_i32 = arith.constant 14 : i32
    %7 = vector.broadcast %c14_i32 : i32 to vector<1x256xi32>
    %8 = arith.cmpi sle, %4, %7 : vector<1x256xi32>
    %c16_i32 = arith.constant 16 : i32
    %9 = vector.broadcast %c16_i32 : i32 to vector<1x256xi32>
    %10 = arith.cmpi sge, %2, %9 : vector<1x256xi32>
    %c240_i32 = arith.constant 240 : i32
    %11 = vector.broadcast %c240_i32 : i32 to vector<1x256xi32>
    %12 = arith.cmpi slt, %2, %11 : vector<1x256xi32>
    %c0 = arith.constant 0 : index
    %c0_0 = arith.constant 0 : index
    %c0_1 = arith.constant 0 : index
    %13 = vector.load %arg1[%c0, %c0_0, %c0_1] : memref<1x8x256xf32, #tpu.memory_space<vmem>>, vector<1x8x256xf32>
    %14 = vector.shape_cast %13 : vector<1x8x256xf32> to vector<8x256xf32>
    %cst = arith.constant 0.000000e+00 : f32
    %15 = vector.broadcast %cst : f32 to vector<8x256xf32>
    %16 = arith.cmpf ogt, %14, %15 : vector<8x256xf32>
    %cst_2 = arith.constant 1.000000e-01 : f32
    %17 = vector.broadcast %cst_2 : f32 to vector<8x256xf32>
    %18 = arith.mulf %17, %14 : vector<8x256xf32>
    %19 = arith.select %16, %14, %18 : vector<8x256xi1>, vector<8x256xf32>
    %c17_i32 = arith.constant 17 : i32
    %20 = tpu.dynamic_rotate %19 by %c17_i32 dim 1 : vector<8x256xf32>, i32 -> vector<8x256xf32>
    %21 = arith.andi %6, %10 : vector<1x256xi1>
    %cst_3 = arith.constant 0.000000e+00 : f32
    %22 = vector.shape_cast %21 : vector<1x256xi1> to vector<1x256xi1>
    %23 = vector.broadcast %22 : vector<1x256xi1> to vector<8x256xi1>
    %24 = vector.broadcast %cst_3 : f32 to vector<8x256xf32>
    %25 = arith.select %23, %20, %24 : vector<8x256xi1>, vector<8x256xf32>
    %c16_i32_4 = arith.constant 16 : i32
    %26 = tpu.dynamic_rotate %19 by %c16_i32_4 dim 1 : vector<8x256xf32>, i32 -> vector<8x256xf32>
    %cst_5 = arith.constant 0.000000e+00 : f32
    %27 = vector.shape_cast %10 : vector<1x256xi1> to vector<1x256xi1>
    %28 = vector.broadcast %27 : vector<1x256xi1> to vector<8x256xi1>
    %29 = vector.broadcast %cst_5 : f32 to vector<8x256xf32>
    %30 = arith.select %28, %26, %29 : vector<8x256xi1>, vector<8x256xf32>
    %c15_i32_6 = arith.constant 15 : i32
    %31 = tpu.dynamic_rotate %19 by %c15_i32_6 dim 1 : vector<8x256xf32>, i32 -> vector<8x256xf32>
    %32 = arith.andi %8, %10 : vector<1x256xi1>
    %cst_7 = arith.constant 0.000000e+00 : f32
    %33 = vector.shape_cast %32 : vector<1x256xi1> to vector<1x256xi1>
    %34 = vector.broadcast %33 : vector<1x256xi1> to vector<8x256xi1>
    %35 = vector.broadcast %cst_7 : f32 to vector<8x256xf32>
    %36 = arith.select %34, %31, %35 : vector<8x256xi1>, vector<8x256xf32>
    %37 = tpu.concatenate %25, %30, %36 in 0 : vector<8x256xf32>, vector<8x256xf32>, vector<8x256xf32> -> vector<24x256xf32>
    %c0_8 = arith.constant 0 : index
    %c0_9 = arith.constant 0 : index
    %c0_10 = arith.constant 0 : index
    %38 = vector.load %arg2[%c0_8, %c0_9, %c0_10] : memref<3x8x24xf32, #tpu.memory_space<vmem>>, vector<1x8x24xf32>
    %39 = vector.shape_cast %38 : vector<1x8x24xf32> to vector<8x24xf32>
    %cst_11 = arith.constant dense<0.000000e+00> : vector<8x256xf32>
    %40 = tpu.matmul %39, %37, %cst_11 {dimension_numbers = #tpu.dot_dimension_numbers<[1], [0], [0], [1], [0, 0, 1, 1], [], []>} : vector<8x24xf32>, vector<24x256xf32>, vector<8x256xf32> -> vector<8x256xf32>
    %c1_i32_12 = arith.constant 1 : i32
    %41 = tpu.dynamic_rotate %19 by %c1_i32_12 dim 1 : vector<8x256xf32>, i32 -> vector<8x256xf32>
    %cst_13 = arith.constant 0.000000e+00 : f32
    %42 = vector.shape_cast %6 : vector<1x256xi1> to vector<1x256xi1>
    %43 = vector.broadcast %42 : vector<1x256xi1> to vector<8x256xi1>
    %44 = vector.broadcast %cst_13 : f32 to vector<8x256xf32>
    %45 = arith.select %43, %41, %44 : vector<8x256xi1>, vector<8x256xf32>
    %c255_i32_14 = arith.constant 255 : i32
    %46 = tpu.dynamic_rotate %19 by %c255_i32_14 dim 1 : vector<8x256xf32>, i32 -> vector<8x256xf32>
    %cst_15 = arith.constant 0.000000e+00 : f32
    %47 = vector.shape_cast %8 : vector<1x256xi1> to vector<1x256xi1>
    %48 = vector.broadcast %47 : vector<1x256xi1> to vector<8x256xi1>
    %49 = vector.broadcast %cst_15 : f32 to vector<8x256xf32>
    %50 = arith.select %48, %46, %49 : vector<8x256xi1>, vector<8x256xf32>
    %51 = tpu.concatenate %45, %19, %50 in 0 : vector<8x256xf32>, vector<8x256xf32>, vector<8x256xf32> -> vector<24x256xf32>
    %c1 = arith.constant 1 : index
    %c0_16 = arith.constant 0 : index
    %c0_17 = arith.constant 0 : index
    %52 = vector.load %arg2[%c1, %c0_16, %c0_17] : memref<3x8x24xf32, #tpu.memory_space<vmem>>, vector<1x8x24xf32>
    %53 = vector.shape_cast %52 : vector<1x8x24xf32> to vector<8x24xf32>
    %cst_18 = arith.constant dense<0.000000e+00> : vector<8x256xf32>
    %54 = tpu.matmul %53, %51, %cst_18 {dimension_numbers = #tpu.dot_dimension_numbers<[1], [0], [0], [1], [0, 0, 1, 1], [], []>} : vector<8x24xf32>, vector<24x256xf32>, vector<8x256xf32> -> vector<8x256xf32>
    %55 = arith.addf %40, %54 : vector<8x256xf32>
    %c241_i32 = arith.constant 241 : i32
    %56 = tpu.dynamic_rotate %19 by %c241_i32 dim 1 : vector<8x256xf32>, i32 -> vector<8x256xf32>
    %57 = arith.andi %6, %12 : vector<1x256xi1>
    %cst_19 = arith.constant 0.000000e+00 : f32
    %58 = vector.shape_cast %57 : vector<1x256xi1> to vector<1x256xi1>
    %59 = vector.broadcast %58 : vector<1x256xi1> to vector<8x256xi1>
    %60 = vector.broadcast %cst_19 : f32 to vector<8x256xf32>
    %61 = arith.select %59, %56, %60 : vector<8x256xi1>, vector<8x256xf32>
    %c240_i32_20 = arith.constant 240 : i32
    %62 = tpu.dynamic_rotate %19 by %c240_i32_20 dim 1 : vector<8x256xf32>, i32 -> vector<8x256xf32>
    %cst_21 = arith.constant 0.000000e+00 : f32
    %63 = vector.shape_cast %12 : vector<1x256xi1> to vector<1x256xi1>
    %64 = vector.broadcast %63 : vector<1x256xi1> to vector<8x256xi1>
    %65 = vector.broadcast %cst_21 : f32 to vector<8x256xf32>
    %66 = arith.select %64, %62, %65 : vector<8x256xi1>, vector<8x256xf32>
    %c239_i32 = arith.constant 239 : i32
    %67 = tpu.dynamic_rotate %19 by %c239_i32 dim 1 : vector<8x256xf32>, i32 -> vector<8x256xf32>
    %68 = arith.andi %8, %12 : vector<1x256xi1>
    %cst_22 = arith.constant 0.000000e+00 : f32
    %69 = vector.shape_cast %68 : vector<1x256xi1> to vector<1x256xi1>
    %70 = vector.broadcast %69 : vector<1x256xi1> to vector<8x256xi1>
    %71 = vector.broadcast %cst_22 : f32 to vector<8x256xf32>
    %72 = arith.select %70, %67, %71 : vector<8x256xi1>, vector<8x256xf32>
    %73 = tpu.concatenate %61, %66, %72 in 0 : vector<8x256xf32>, vector<8x256xf32>, vector<8x256xf32> -> vector<24x256xf32>
    %c2 = arith.constant 2 : index
    %c0_23 = arith.constant 0 : index
    %c0_24 = arith.constant 0 : index
    %74 = vector.load %arg2[%c2, %c0_23, %c0_24] : memref<3x8x24xf32, #tpu.memory_space<vmem>>, vector<1x8x24xf32>
    %75 = vector.shape_cast %74 : vector<1x8x24xf32> to vector<8x24xf32>
    %cst_25 = arith.constant dense<0.000000e+00> : vector<8x256xf32>
    %76 = tpu.matmul %75, %73, %cst_25 {dimension_numbers = #tpu.dot_dimension_numbers<[1], [0], [0], [1], [0, 0, 1, 1], [], []>} : vector<8x24xf32>, vector<24x256xf32>, vector<8x256xf32> -> vector<8x256xf32>
    %77 = arith.addf %55, %76 : vector<8x256xf32>
    %c0_26 = arith.constant 0 : index
    %c0_27 = arith.constant 0 : index
    %78 = vector.load %arg3[%c0_26, %c0_27] : memref<8x1xf32, #tpu.memory_space<vmem>>, vector<8x1xf32>
    %79 = vector.broadcast %78 : vector<8x1xf32> to vector<8x256xf32>
    %80 = arith.addf %77, %79 : vector<8x256xf32>
    %cst_28 = arith.constant 0.000000e+00 : f32
    %81 = vector.broadcast %cst_28 : f32 to vector<8x256xf32>
    %82 = arith.cmpf ogt, %80, %81 : vector<8x256xf32>
    %cst_29 = arith.constant 1.000000e-01 : f32
    %83 = vector.broadcast %cst_29 : f32 to vector<8x256xf32>
    %84 = arith.mulf %83, %80 : vector<8x256xf32>
    %85 = arith.select %82, %80, %84 : vector<8x256xi1>, vector<8x256xf32>
    %c17_i32_30 = arith.constant 17 : i32
    %86 = tpu.dynamic_rotate %85 by %c17_i32_30 dim 1 : vector<8x256xf32>, i32 -> vector<8x256xf32>
    %87 = arith.andi %6, %10 : vector<1x256xi1>
    %cst_31 = arith.constant 0.000000e+00 : f32
    %88 = vector.shape_cast %87 : vector<1x256xi1> to vector<1x256xi1>
    %89 = vector.broadcast %88 : vector<1x256xi1> to vector<8x256xi1>
    %90 = vector.broadcast %cst_31 : f32 to vector<8x256xf32>
    %91 = arith.select %89, %86, %90 : vector<8x256xi1>, vector<8x256xf32>
    %c16_i32_32 = arith.constant 16 : i32
    %92 = tpu.dynamic_rotate %85 by %c16_i32_32 dim 1 : vector<8x256xf32>, i32 -> vector<8x256xf32>
    %cst_33 = arith.constant 0.000000e+00 : f32
    %93 = vector.shape_cast %10 : vector<1x256xi1> to vector<1x256xi1>
    %94 = vector.broadcast %93 : vector<1x256xi1> to vector<8x256xi1>
    %95 = vector.broadcast %cst_33 : f32 to vector<8x256xf32>
    %96 = arith.select %94, %92, %95 : vector<8x256xi1>, vector<8x256xf32>
    %c15_i32_34 = arith.constant 15 : i32
    %97 = tpu.dynamic_rotate %85 by %c15_i32_34 dim 1 : vector<8x256xf32>, i32 -> vector<8x256xf32>
    %98 = arith.andi %8, %10 : vector<1x256xi1>
    %cst_35 = arith.constant 0.000000e+00 : f32
    %99 = vector.shape_cast %98 : vector<1x256xi1> to vector<1x256xi1>
    %100 = vector.broadcast %99 : vector<1x256xi1> to vector<8x256xi1>
    %101 = vector.broadcast %cst_35 : f32 to vector<8x256xf32>
    %102 = arith.select %100, %97, %101 : vector<8x256xi1>, vector<8x256xf32>
    %103 = tpu.concatenate %91, %96, %102 in 0 : vector<8x256xf32>, vector<8x256xf32>, vector<8x256xf32> -> vector<24x256xf32>
    %c0_36 = arith.constant 0 : index
    %c0_37 = arith.constant 0 : index
    %c0_38 = arith.constant 0 : index
    %104 = vector.load %arg4[%c0_36, %c0_37, %c0_38] : memref<3x8x24xf32, #tpu.memory_space<vmem>>, vector<1x8x24xf32>
    %105 = vector.shape_cast %104 : vector<1x8x24xf32> to vector<8x24xf32>
    %cst_39 = arith.constant dense<0.000000e+00> : vector<8x256xf32>
    %106 = tpu.matmul %105, %103, %cst_39 {dimension_numbers = #tpu.dot_dimension_numbers<[1], [0], [0], [1], [0, 0, 1, 1], [], []>} : vector<8x24xf32>, vector<24x256xf32>, vector<8x256xf32> -> vector<8x256xf32>
    %c1_i32_40 = arith.constant 1 : i32
    %107 = tpu.dynamic_rotate %85 by %c1_i32_40 dim 1 : vector<8x256xf32>, i32 -> vector<8x256xf32>
    %cst_41 = arith.constant 0.000000e+00 : f32
    %108 = vector.shape_cast %6 : vector<1x256xi1> to vector<1x256xi1>
    %109 = vector.broadcast %108 : vector<1x256xi1> to vector<8x256xi1>
    %110 = vector.broadcast %cst_41 : f32 to vector<8x256xf32>
    %111 = arith.select %109, %107, %110 : vector<8x256xi1>, vector<8x256xf32>
    %c255_i32_42 = arith.constant 255 : i32
    %112 = tpu.dynamic_rotate %85 by %c255_i32_42 dim 1 : vector<8x256xf32>, i32 -> vector<8x256xf32>
    %cst_43 = arith.constant 0.000000e+00 : f32
    %113 = vector.shape_cast %8 : vector<1x256xi1> to vector<1x256xi1>
    %114 = vector.broadcast %113 : vector<1x256xi1> to vector<8x256xi1>
    %115 = vector.broadcast %cst_43 : f32 to vector<8x256xf32>
    %116 = arith.select %114, %112, %115 : vector<8x256xi1>, vector<8x256xf32>
    %117 = tpu.concatenate %111, %85, %116 in 0 : vector<8x256xf32>, vector<8x256xf32>, vector<8x256xf32> -> vector<24x256xf32>
    %c1_44 = arith.constant 1 : index
    %c0_45 = arith.constant 0 : index
    %c0_46 = arith.constant 0 : index
    %118 = vector.load %arg4[%c1_44, %c0_45, %c0_46] : memref<3x8x24xf32, #tpu.memory_space<vmem>>, vector<1x8x24xf32>
    %119 = vector.shape_cast %118 : vector<1x8x24xf32> to vector<8x24xf32>
    %cst_47 = arith.constant dense<0.000000e+00> : vector<8x256xf32>
    %120 = tpu.matmul %119, %117, %cst_47 {dimension_numbers = #tpu.dot_dimension_numbers<[1], [0], [0], [1], [0, 0, 1, 1], [], []>} : vector<8x24xf32>, vector<24x256xf32>, vector<8x256xf32> -> vector<8x256xf32>
    %121 = arith.addf %106, %120 : vector<8x256xf32>
    %c241_i32_48 = arith.constant 241 : i32
    %122 = tpu.dynamic_rotate %85 by %c241_i32_48 dim 1 : vector<8x256xf32>, i32 -> vector<8x256xf32>
    %123 = arith.andi %6, %12 : vector<1x256xi1>
    %cst_49 = arith.constant 0.000000e+00 : f32
    %124 = vector.shape_cast %123 : vector<1x256xi1> to vector<1x256xi1>
    %125 = vector.broadcast %124 : vector<1x256xi1> to vector<8x256xi1>
    %126 = vector.broadcast %cst_49 : f32 to vector<8x256xf32>
    %127 = arith.select %125, %122, %126 : vector<8x256xi1>, vector<8x256xf32>
    %c240_i32_50 = arith.constant 240 : i32
    %128 = tpu.dynamic_rotate %85 by %c240_i32_50 dim 1 : vector<8x256xf32>, i32 -> vector<8x256xf32>
    %cst_51 = arith.constant 0.000000e+00 : f32
    %129 = vector.shape_cast %12 : vector<1x256xi1> to vector<1x256xi1>
    %130 = vector.broadcast %129 : vector<1x256xi1> to vector<8x256xi1>
    %131 = vector.broadcast %cst_51 : f32 to vector<8x256xf32>
    %132 = arith.select %130, %128, %131 : vector<8x256xi1>, vector<8x256xf32>
    %c239_i32_52 = arith.constant 239 : i32
    %133 = tpu.dynamic_rotate %85 by %c239_i32_52 dim 1 : vector<8x256xf32>, i32 -> vector<8x256xf32>
    %134 = arith.andi %8, %12 : vector<1x256xi1>
    %cst_53 = arith.constant 0.000000e+00 : f32
    %135 = vector.shape_cast %134 : vector<1x256xi1> to vector<1x256xi1>
    %136 = vector.broadcast %135 : vector<1x256xi1> to vector<8x256xi1>
    %137 = vector.broadcast %cst_53 : f32 to vector<8x256xf32>
    %138 = arith.select %136, %133, %137 : vector<8x256xi1>, vector<8x256xf32>
    %139 = tpu.concatenate %127, %132, %138 in 0 : vector<8x256xf32>, vector<8x256xf32>, vector<8x256xf32> -> vector<24x256xf32>
    %c2_54 = arith.constant 2 : index
    %c0_55 = arith.constant 0 : index
    %c0_56 = arith.constant 0 : index
    %140 = vector.load %arg4[%c2_54, %c0_55, %c0_56] : memref<3x8x24xf32, #tpu.memory_space<vmem>>, vector<1x8x24xf32>
    %141 = vector.shape_cast %140 : vector<1x8x24xf32> to vector<8x24xf32>
    %cst_57 = arith.constant dense<0.000000e+00> : vector<8x256xf32>
    %142 = tpu.matmul %141, %139, %cst_57 {dimension_numbers = #tpu.dot_dimension_numbers<[1], [0], [0], [1], [0, 0, 1, 1], [], []>} : vector<8x24xf32>, vector<24x256xf32>, vector<8x256xf32> -> vector<8x256xf32>
    %143 = arith.addf %121, %142 : vector<8x256xf32>
    %c0_58 = arith.constant 0 : index
    %c0_59 = arith.constant 0 : index
    %144 = vector.load %arg5[%c0_58, %c0_59] : memref<8x1xf32, #tpu.memory_space<vmem>>, vector<8x1xf32>
    %145 = vector.broadcast %144 : vector<8x1xf32> to vector<8x256xf32>
    %146 = arith.addf %143, %145 : vector<8x256xf32>
    %c0_60 = arith.constant 0 : index
    %c0_61 = arith.constant 0 : index
    %c0_62 = arith.constant 0 : index
    %147 = vector.load %arg1[%c0_60, %c0_61, %c0_62] : memref<1x8x256xf32, #tpu.memory_space<vmem>>, vector<1x8x256xf32>
    %148 = vector.shape_cast %147 : vector<1x8x256xf32> to vector<8x256xf32>
    %149 = arith.addf %146, %148 : vector<8x256xf32>
    %c0_63 = arith.constant 0 : index
    %c0_64 = arith.constant 0 : index
    %c0_65 = arith.constant 0 : index
    %150 = vector.load %arg6[%c0_63, %c0_64, %c0_65] : memref<1x8x256xf32, #tpu.memory_space<vmem>>, vector<1x8x256xf32>
    %151 = vector.shape_cast %150 : vector<1x8x256xf32> to vector<8x256xf32>
    %152 = vector.shape_cast %149 : vector<8x256xf32> to vector<1x8x256xf32>
    tpu.vector_store %arg6[%c0_63, %c0_64, %c0_65], %152 {strides = array<i32>} : memref<1x8x256xf32, #tpu.memory_space<vmem>>, vector<1x8x256xf32>,
    return
  }
  func.func @transform_0(%arg0: i32) -> (i32, i32, i32) {
    %c0_i32 = arith.constant 0 : i32
    %c0_i32_0 = arith.constant 0 : i32
    %c0_i32_1 = arith.constant 0 : i32
    return %arg0, %c0_i32, %c0_i32_0 : i32, i32, i32
  }
  func.func @transform_1(%arg0: i32) -> (i32, i32, i32) {
    %c0_i32 = arith.constant 0 : i32
    %c0_i32_0 = arith.constant 0 : i32
    %c0_i32_1 = arith.constant 0 : i32
    %c0_i32_2 = arith.constant 0 : i32
    return %c0_i32, %c0_i32_0, %c0_i32_1 : i32, i32, i32
  }
  func.func @transform_2(%arg0: i32) -> (i32, i32) {
    %c0_i32 = arith.constant 0 : i32
    %c0_i32_0 = arith.constant 0 : i32
    %c0_i32_1 = arith.constant 0 : i32
    return %c0_i32, %c0_i32_0 : i32, i32
  }
  func.func @transform_3(%arg0: i32) -> (i32, i32, i32) {
    %c0_i32 = arith.constant 0 : i32
    %c0_i32_0 = arith.constant 0 : i32
    %c0_i32_1 = arith.constant 0 : i32
    %c0_i32_2 = arith.constant 0 : i32
    return %c0_i32, %c0_i32_0, %c0_i32_1 : i32, i32, i32
  }
  func.func @transform_4(%arg0: i32) -> (i32, i32) {
    %c0_i32 = arith.constant 0 : i32
    %c0_i32_0 = arith.constant 0 : i32
    %c0_i32_1 = arith.constant 0 : i32
    return %c0_i32, %c0_i32_0 : i32, i32
  }
  func.func @transform_5(%arg0: i32) -> (i32, i32, i32) {
    %c0_i32 = arith.constant 0 : i32
    %c0_i32_0 = arith.constant 0 : i32
    %c0_i32_1 = arith.constant 0 : i32
    return %arg0, %c0_i32, %c0_i32_0 : i32, i32, i32
  }
}

</mosaic_0001>

<bundles_post_ra>
// kernel: tpu_custom_call.1
= control target key start
LH: loop header
LB: loop body
LE: loop exit
PB: predicated region body
PF: predicated region fallthrough
CT: control target
= control target key end

     0   :  { %10 = vsyncpa [#allocation3], 0  ;;  %s1903_s0 = inlined_call_operand.hbm [shape: f32[2,8,256], index: 0, kind: input, shape index: {}]   ;;  %s1904_s1 = inlined_call_operand.hbm [shape: f32[3,8,24], index: 1, kind: input, shape index: {}]   ;;  %s1905_s2 = inlined_call_operand.vmem [shape: f32[8,1], index: 2, kind: input, shape index: {}]   ;;  %s1906_s3 = inlined_call_operand.vmem [shape: f32[3,8,24], index: 3, kind: input, shape index: {}]   ;;  %s1907_s4 = inlined_call_operand.vmem [shape: f32[8,1], index: 4, kind: input, shape index: {}]   ;;  %s1908_s5 = inlined_call_operand.hbm [shape: f32[2,8,256], index: 5, kind: output, shape index: {}]  }
   0x1   :  { %12 = vsyncpa [#allocation3 + $0x1], 0 }
   0x2   :  { %13 = vsyncpa [#allocation6], 0 }
   0x3   :  { %14 = vsyncpa [#allocation4], 0 }
   0x4   :  { %16 = vsyncpa [#allocation4 + $0x1], 0  ;;  %s1431_s18 = smov 0   ;;  %s1433_s19 = smov 0  }
   0x5   :  { %s1435_s20 = smov 0   ;;  %s1437_s21 = smov 0  }
   0x6 LB: > { %s1452_s22 = sadd.s32 4294967295, %s1383_s21   ;;  %s1035_s23 = sadd.s32 4294967294, %s1383_s21   ;;  %s1383_s21 = sphi %s1437_s21, %s1968_s21   ;;  %s1379_s20 = sphi %s1435_s20, %s1967_s20   ;;  %s1375_s19 = sphi %s1433_s19, %s1966_s19   ;;  %s1371_s18 = sphi %s1431_s18, %s1965_s18  }
   0x7   : > { %p42_p0 = scmp.ne.s32.totalorder %s1375_s19, %s1371_s18  ;;  %p1909_p1 = scmp.eq.s32.totalorder %s1452_s22, 0 }
   0x8   : > { %p156_p3 = scmp.eq.s32.totalorder %s1035_s23, 1  ;;  %p1036_p5 = scmp.ge.s32.totalorder %s1383_s21, 1 }
   0x9   : > { %p1461_p4 = por %p1909_p1, %p42_p0  ;;  %p163_p7 = scmp.lt.s32.totalorder %s1383_s21, 3 }
   0xa   : > { %p1466_p6 = por %p156_p3, %p42_p0  ;;  %s1385_s27 = smov [#allocation5]  }
   0xb   : > { %s1921_s24 = scalar_select %p1461_p4, 1, 0 }
   0xc   : > { %s1922_s25 = scalar_select %p1466_p6, 1, 0 }
   0xd   : > { %p1471_p8 = pnand %p1036_p5, %p163_p7  ;;  %s175_s28 = sshll.u32 %s1385_s27, 4  ;;  %s1475_s28 = int_to_ptr.vmem [resolvable:$true] %s175_s28 }
   0xe   : > { %s1487_s30 = sadd.s32 1, %s1383_s21   ;;  %s29_s6 = sadd.s32 1, %s1379_s20 }
   0xf   : > { %s1923_s26 = scalar_select %p1471_p8, 1, 0 }
  0x10   : > { %p1141_p9 = pneg %p1471_p8  ;;  %s26_s7 = ssub.s32 %s1383_s21, %s1487_s30 }
  0x11   : > { %s1255_s10 = scalar_lea.hbm %s1904_s1, 384 }
  0x12   : > { %p1482_p11 = pnand %p1141_p9, %p1909_p1  ;;  %p1256_p12 = scmp.ne.s32.totalorder %s1904_s1, %s1255_s10 }
  0x13   : > { %p1262_p5 = scmp.lt.u32.totalorder %s1255_s10, %s1904_s1 }
  0x14   : > { %p1257_p13 = pneg %p1482_p11 }
  0x16   : > { %p1258_p0 = pnand %p1257_p13, %p1256_p12 }
  0x18   : > { %p1259_p3 = pneg %p1258_p0 }
  0x1a   : > { %p1264_p7 = pnand %p1262_p5, %p1259_p3 }
  0x1c   : > { %1267 = shalt.err (!%p1264_p7)
}
  0x1d   : > { %s1268_s15 = scalar_lea.vmem %s1475_s28, 384  ;;  %p1276_p2 = scmp.lt.s32.totalorder %s1475_s28, %s1475_s28 }
  0x1e   : > { %p1269_p9 = scmp.ne.s32.totalorder %s1475_s28, %s1268_s15  ;;  %p1277_p6 = scmp.lt.s32.totalorder %s1268_s15, %s1268_s15 }
  0x20   : > { %p1271_p10 = pnand %p1269_p9, %p1257_p13  ;;  %p1278_p4 = por %p1277_p6, %p1276_p2 }
  0x22   : > { %p1272_p1 = pneg %p1271_p10 }
  0x24   : > { %p1279_p8 = pnand %p1278_p4, %p1272_p1 }
  0x26   : > { %1282 = shalt.err (!%p1279_p8)
}
  0x27   : > { %s1386_s16 = smov 128   ;;  %s1387_s17 = smov 8  }
  0x28   : > { %1144 = dma.hbm_to_vmem [thread:$0]  (!%p1482_p11), %s1904_s1, 384, %s1475_s28, [#allocation6], %s1386_s16, %s1386_s16, %s1387_s17  }
  0x29   : > { %p27_p2 = scmp.eq.s32.totalorder %s26_s7, 0  ;;  %p36_p1 = scmp.ne.s32.totalorder %s1379_s20, %s1375_s19 }
  0x2a   : > { %p37_p4 = scmp.eq.s32.totalorder %s1383_s21, 0  ;;  %p1154_p6 = scmp.lt.s32.totalorder %s1383_s21, 2 }
  0x2b   : > { %s1518_s8 = scalar_select %p27_p2, %s1379_s20, %s29_s6  }
  0x2c   : > { %p38_p8 = por %p37_p4, %p36_p1  ;;  %p1925_p10 = scmp.eq.s32.totalorder %s1452_s22, 1 }
  0x2d   : > { %s198_s10 = sand.u32 1, %s1379_s20   ;;  %s1087_s11 = sshll.u32 %s1383_s21, 8 }
  0x2e   : > { %p1522_p12 = por %p1925_p10, %p36_p1  ;;  %s1039_s12 = sshll.u32 %s198_s10, 4 }
  0x2f   : > { %s1531_s14 = scalar_lea.hbm %s1903_s0, %s1087_s11  ;;  %s202_s28 = scalar_lea.vmem [#allocation2], %s1039_s12 }
  0x30   : > { %s210_s6 = sshll.u32 %s202_s28, 4  ;;  %p1533_p11 = pnand %p1154_p6, %p38_p8  ;;  %s1537_s6 = int_to_ptr.vmem [resolvable:$true] %s210_s6 }
  0x31   : > { %s199_s15 = scalar_lea.sflag [#allocation3], %s198_s10  ;;  %s1283_s16 = scalar_lea.hbm %s1531_s14, 256 }
  0x32   : > { %p1284_p13 = scmp.ne.s32.totalorder %s1531_s14, %s1283_s16  ;;  %p1285_p0 = pneg %p1533_p11 }
  0x33   : > { %s1288_s27 = scalar_lea.hbm %s1903_s0, 512  ;;  %p1289_p7 = scmp.lt.u32.totalorder %s1531_s14, %s1903_s0 }
  0x34   : > { %p1286_p3 = pnand %p1285_p0, %p1284_p13  ;;  %p1290_p9 = scmp.lt.u32.totalorder %s1288_s27, %s1283_s16 }
  0x35   : > { %p1292_p1 = scmp.lt.u32.totalorder %s1283_s16, %s1531_s14 }
  0x36   : > { %p1287_p5 = pneg %p1286_p3  ;;  %p1291_p2 = por %p1290_p9, %p1289_p7 }
  0x38   : > { %p1293_p4 = por %p1292_p1, %p1291_p2 }
  0x3a   : > { %p1294_p6 = pnand %p1293_p4, %p1287_p5 }
  0x3c   : > { %1297 = shalt.err (!%p1294_p6)
}
  0x3d   : > { %s1298_s10 = scalar_lea.vmem %s1537_s6, 256  ;;  %s1388_s29 = smov [#allocation2]  }
  0x3e   : > { %p1299_p8 = scmp.ne.s32.totalorder %s1537_s6, %s1298_s10  ;;  %s1303_s13 = sshll.u32 %s1388_s29, 4  ;;  %s1304_s13 = int_to_ptr.vmem [resolvable:$false] %s1303_s13 }
  0x3f   : > { %s1305_s28 = scalar_lea.vmem %s1304_s13, 512  ;;  %p1306_p3 = scmp.lt.s32.totalorder %s1537_s6, %s1304_s13 }
  0x40   : > { %p1301_p10 = pnand %p1299_p8, %p1285_p0  ;;  %p1307_p7 = scmp.lt.s32.totalorder %s1305_s28, %s1298_s10 }
  0x42   : > { %p1302_p13 = pneg %p1301_p10  ;;  %p1308_p9 = por %p1307_p7, %p1306_p3 }
  0x44   : > { %p1309_p2 = pnand %p1308_p9, %p1302_p13 }
  0x46   : > { %1312 = shalt.err (!%p1309_p2)
}
  0x47   : > { %1148 = dma.hbm_to_vmem [thread:$0]  (!%p1533_p11), %s1531_s14, 256, %s1537_s6, %s199_s15  }
  0x48   : > { %p1928_p5 = scmp.ne.s32.totalorder %s1923_s26, 0 }
  0x49   : > { %s1567_s16 = sand.u32 (!%p1928_p5), 1, %s1375_s19   ;;  %p1929_p0 = scmp.ne.s32.totalorder (!%p1928_p5), %s1921_s24, 0 }
  0x4a   : > { %219 = sbr.rel (%p1928_p5) target bundleno = 827 (0x33b), region = 40  ;;  %s1043_s17 = sshll.u32 (!%p1928_p5), %s1567_s16, 4 }
  0x4b   : > { %s222_s23 = scalar_lea.sflag (!%p1928_p5), [#allocation3], %s1567_s16  ;;  %s225_s27 = scalar_lea.vmem (!%p1928_p5), [#allocation2], %s1043_s17 }
  0x51   : > { %1358 = dma.done.wait (%p1929_p0), %s222_s23, 256  }
  0x52   : > { %1360 = vsyncadd (%p1929_p0), %s222_s23, 4294967040  ;;  %p1930_p11 = scmp.eq.s32.totalorder %s1452_s22, 0 }
  0x54   : > { %1362 = dma.done.wait (%p1930_p11), [#allocation6], 384   ;;  %p1931_p1 = pmov %p1930_p11 }
  0x55   : > { %v1581_v0 = vld [vmem:[%s225_s27] sm:$0xff]  ;;  %v1583_v1 = vld [vmem:[%s225_s27 + $0x8] sm:$0xff]  ;;  %v1389_v6 = vmov 0.0   ;;  %s1390_s24 = smov 127   ;;  %s1391_s26 = smov 1   ;;  %v1397_v8 = vmov 0   ;;  %v256_v10 = vlaneseq }
  0x56   : > { %1364 = vsyncadd (%p1931_p1), [#allocation6], 4294966912  ;;  %vm273_vm0 = vcmp.gt.f32.partialorder %v1581_v0, 0.0  ;;  %vm274_vm1 = vcmp.gt.f32.partialorder %v1583_v1, 0.0  ;;  %v275_v2 = vmul.f32 0.1, %v1581_v0  ;;  %419 = vmatprep.mubr.f32.mxu0 %v1389_v6  ;;  %745 = vmatprep.mubr.f32.mxu1 %v1389_v6 }
  0x57   : > { %v276_v3 = vmul.f32 0.1, %v1583_v1  ;;  %s1392_s14 = smov 17   ;;  %s1393_s6 = smov 15   ;;  %1228 = vset.pattern.permute.xlu1 %v1397_v8  ;;  %v621_v9 = vld [vmem:[%s1905_s2] sm:$0xff]  ;;  %1254 = vset.pattern.permute.xlu0 %v1397_v8  ;;  %v1613_v11 = vand.u32 127, %v256_v10 }
  0x58   : > { %v1590_v4 = vsel %vm273_vm0, %v1581_v0, %v275_v2  ;;  %s1394_s7 = smov 16   ;;  %s1395_s15 = smov 113   ;;  %vm1399_vm5 = vmmov 1   ;;  %vm351_vm14 = vcmask 195584   ;;  %v350_v40 = vld [vmem:[#allocation5 + $0x8] sm:$0xff]  ;;  %v322_v59 = vld [vmem:[#allocation5] sm:$0xff] }
  0x59   : > { %v278_v5 = vsel %vm274_vm1, %v1583_v1, %v276_v3  ;;  %s1396_s11 = smov 111   ;;  %s1398_s29 = smov 112   ;;  %v258_v12 = vadd.s32 128, %v1613_v11  ;;  %v259_v14 = vand.u32 255, %v1613_v11  ;;  %vm327_vm3 = vcmp.lt.s32.totalorder %v1613_v11, 1  ;;  %v659_v23 = vld [vmem:[%s1906_s3] sm:$0xff] }
  0x5a   : > { %v1203_v7 = vpack.i.bf16 %v278_v5, %v1590_v4  ;;  %338 = vrot.lane.b32.xlu1 %v278_v5, %s1390_s24  ;;  %vm1914_vm7 = vcmp.lt.s32.totalorder %v1613_v11, 127  ;;  %vm1913_vm11 = vcmp.lt.s32.totalorder %v1613_v11, 17  ;;  %vm1912_vm12 = vcmp.lt.s32.totalorder %v1613_v11, 16  ;;  %s1400_s13 = smov [#allocation7]  }
  0x5b   : > { %v260_v13 = vand.u32 255, %v258_v12  ;;  %v1619_v16 = vand.u32 15, %v259_v14  ;;  %vm1645_vm10 = vcmp.ge.s32.totalorder %v259_v14, 16  ;;  %vm311_vm0 = vcmp.lt.s32.totalorder %v1613_v11, 15  ;;  %s1317_s28 = sshll.u32 %s1400_s13, 4  ;;  %s1318_s28 = int_to_ptr.vmem [resolvable:$false] %s1317_s28 }
  0x5c   : > { %1204 = vrot.lane.b32.xlu0 %v1203_v7, %s1391_s26  ;;  %s1319_s23 = scalar_lea.vmem %s1318_s28, 512 }
  0x5d   : > { %v1617_v15 = vand.u32 15, %v260_v13  ;;  %vm263_vm4 = vcmp.ge.s32.totalorder %v1619_v16, 1  ;;  %vm265_vm13 = vcmp.le.s32.totalorder %v1619_v16, 14 }
  0x5e   : > { %1209 = vrot.lane.b32.xlu1 %v1203_v7, %s1392_s14  ;;  %vm1638_vm8 = vmpackc.low %vm1399_vm5, %vm263_vm4 }
  0x5f   : > { %vm264_vm2 = vcmp.ge.s32.totalorder %v1617_v15, 1  ;;  %vm1920_vm9 = vcmp.le.s32.totalorder %v1617_v15, 14  ;;  %vm1662_vm15 = vmand %vm263_vm4, %vm1645_vm10  ;;  %vm1685_vm4 = vcmp.lt.s32.totalorder %v260_v13, 240 }
  0x60   : > { %336 = vrot.lane.b32.xlu0 %v1590_v4, %s1390_s24  ;;  %vm1628_vm6 = vmpackc.low %vm1399_vm5, %vm264_vm2  ;;  %vm1918_vm5 = vcmp.lt.s32.totalorder %v1613_v11, 113 }
  0x61   : > { %vm1915_vm1 = vmpackc.low %vm1645_vm10, %vm1662_vm15 }
  0x62   : > { %307 = vrot.lane.b32.xlu1 %v1590_v4, %s1393_s6 }
  0x64   : > { %1214 = vrot.lane.b32.xlu0 %v1203_v7, %s1394_s7 }
  0x66   : > { %1219 = vrot.lane.b32.xlu1 %v1203_v7, %s1395_s15 }
  0x68   : > { %309 = vrot.lane.b32.xlu0 %v278_v5, %s1393_s6 }
  0x6a   : > { %528 = vrot.lane.b32.xlu1 %v1590_v4, %s1396_s11 }
  0x6c   : > { %1224 = vrot.lane.b32.xlu0 %v1203_v7, %s1398_s29 }
  0x6e   : > { %624 = vperm.xlu1 %1228, %v621_v9   ;;  %v544_v9 = vld [vmem:[#allocation5 + $0x10] sm:$0xff] }
  0x70   : > { %530 = vrot.lane.b32.xlu0 %v278_v5, %s1396_s11 }
  0xcc   : > { %v339_v17 = vpop.permute.xlu1 %338 }
  0xce   : > { %v1205_v18 = vpop.permute.xlu0 %1204 }
  0xcf   : > { %v1207_v19 = vunpack.i.h.bf16 %v1205_v18  ;;  %v1206_v20 = vunpack.i.l.bf16 %v1205_v18 }
  0xd0   : > { %v1210_v21 = vpop.permute.xlu1 %1209 }
  0xd1   : > { %v328_v22 = vsel %vm327_vm3, %v1206_v20, %v1207_v19  ;;  %v329_v24 = vsel %vm327_vm3, %v1207_v19, %v1206_v20  ;;  %v1212_v29 = vunpack.i.h.bf16 %v1210_v21  ;;  %v1211_v30 = vunpack.i.l.bf16 %v1210_v21 }
  0xd2   : > { %v337_v25 = vpop.permute.xlu0 %336  ;;  %v1089_v26 = vpack.c.bf16 %v278_v5, %v328_v22  ;;  %v1092_v27 = vpack.c.bf16 %v1590_v4, %v329_v24  ;;  %v928_v24 = vld [vmem:[%s1907_s4] sm:$0xff] }
  0xd3   : > { %v342_v33 = vsel %vm1914_vm7, %v339_v17, %v337_v25  ;;  %v284_v36 = vsel %vm1913_vm11, %v1211_v30, %v1212_v29  ;;  %v285_v37 = vsel %vm1913_vm11, %v1212_v29, %v1211_v30  ;;  %v341_v41 = vsel %vm1914_vm7, %v337_v25, %v339_v17  ;;  %vm1714_vm7 = vmand %vm264_vm2, %vm1685_vm4 }
  0xd4   : > { %1091 = vmatprep.subr.msk.bf16.mxu0 %vm1628_vm6, %v1089_v26  ;;  %v308_v32 = vpop.permute.xlu1 %307  ;;  %vm1916_vm11 = vcmp.lt.s32.totalorder %v1613_v11, 112  ;;  %vm1917_vm2 = vmpackc.low %vm1685_vm4, %vm1714_vm7 }
  0xd5   : > { %1094 = vmatpush1.bf16.msk.msra.mxu0 %vm1638_vm8, %v1092_v27 }
  0xd6   : > { %v1215_v34 = vpop.permute.xlu0 %1214  ;;  %1048 = vmatprep.subr.msk.mxu0 %vm1920_vm9, %v342_v33 }
  0xd7   : > { %v1217_v38 = vunpack.i.h.bf16 %v1215_v34  ;;  %v1216_v39 = vunpack.i.l.bf16 %v1215_v34 }
  0xd8   : > { %v1220_v42 = vpop.permute.xlu1 %1219 }
  0xd9   : > { %v299_v43 = vsel %vm1912_vm12, %v1216_v39, %v1217_v38  ;;  %v300_v44 = vsel %vm1912_vm12, %v1217_v38, %v1216_v39  ;;  %1049 = vmatpush1.msk.msra.mxu0 %vm265_vm13, %v341_v41  ;;  %v1222_v48 = vunpack.i.h.bf16 %v1220_v42  ;;  %v1221_v49 = vunpack.i.l.bf16 %v1220_v42  ;;  %vm1703_vm12 = vmand %vm265_vm13, %vm1645_vm10 }
  0xda   : > { %v1095_v45 = vpack.c.bf16 %v299_v43, %v284_v36  ;;  %v1098_v46 = vpack.c.bf16 %v300_v44, %v285_v37  ;;  %v310_v47 = vpop.permute.xlu0 %309  ;;  %1050 = vmatmul.mubr.msk.f32.vlgmr.msra.gmra.mrb[0].mxu0 %vm351_vm14, %v350_v40 }
  0xdb   : > { %493 = vmatprep.mubr.f32.mxu0 %v1389_v6  ;;  %v312_v51 = vsel %vm311_vm0, %v308_v32, %v310_v47  ;;  %v505_v55 = vsel %vm1918_vm5, %v1221_v49, %v1222_v48  ;;  %v506_v56 = vsel %vm1918_vm5, %v1222_v48, %v1221_v49  ;;  %v313_v60 = vsel %vm311_vm0, %v310_v47, %v308_v32 }
  0xdc   : > { %1097 = vmatprep.subr.msk.bf16.mxu0 %vm1628_vm6, %v1095_v45  ;;  %v529_v61 = vpop.permute.xlu1 %528  ;;  %v1063_v45 = vld [vmem:[%s1906_s3 + $0x8] sm:$0xff] }
  0xdd   : > { %1100 = vmatpush1.bf16.msk.msra.mxu0 %vm1915_vm1, %v1098_v46  ;;  %vm1919_vm1 = vcmp.lt.s32.totalorder %v1613_v11, 111 }
  0xde   : > { %v1225_v53 = vpop.permute.xlu0 %1224  ;;  %1054 = vmatprep.subr.msk.mxu0 %vm1920_vm9, %v312_v51 }
  0xdf   : > { %v1227_v57 = vunpack.i.h.bf16 %v1225_v53  ;;  %v1226_v58 = vunpack.i.l.bf16 %v1225_v53 }
  0xe1   : > { %v520_v62 = vsel %vm1916_vm11, %v1226_v58, %v1227_v57  ;;  %v521_v63 = vsel %vm1916_vm11, %v1227_v57, %v1226_v58  ;;  %1055 = vmatpush1.msk.msra.mxu0 %vm1703_vm12, %v313_v60  ;;  %vm1742_vm11 = vmand %vm1920_vm9, %vm1685_vm4 }
  0xe2   : > { %v1101_v2 = vpack.c.bf16 %v521_v63, %v506_v56  ;;  %v1104_v3 = vpack.c.bf16 %v520_v62, %v505_v55  ;;  %1056 = vmatmul.mubr.msk.f32.vlgmr.msra.gmra.mrb[0].mxu0 %vm351_vm14, %v322_v59  ;;  %v531_v4 = vpop.permute.xlu0 %530 }
  0xe3   : > { %v534_v5 = vsel %vm1919_vm1, %v531_v4, %v529_v61  ;;  %612 = vmatprep.mubr.f32.mxu0 %v1389_v6  ;;  %v533_v8 = vsel %vm1919_vm1, %v529_v61, %v531_v4  ;;  %vm1952_vm1 = vcmp.lt.s32.totalorder %v1613_v11, 16 }
  0xe4   : > { %1103 = vmatprep.subr.msk.bf16.mxu0 %vm1917_vm2, %v1101_v2 }
  0xe5   : > { %1106 = vmatpush1.bf16.msk.msra.mxu0 %vm1638_vm8, %v1104_v3 }
  0xe6   : > { %1060 = vmatprep.subr.msk.mxu0 %vm1742_vm11, %v534_v5 }
  0xe9   : > { %1061 = vmatpush1.msk.msra.mxu0 %vm265_vm13, %v533_v8 }
  0xea   : > { %1062 = vmatmul.mubr.msk.f32.vlgmr.msra.gmra.mrb[0].mxu0 %vm351_vm14, %v544_v9 }
  0xed   : > { %v625_v10 = vpop.permute.xlu1 %624 }
 0x1bd   : > { %v614_v12 = vpop.f32.mrb[0].mxu0 }
 0x1be   : > { %v627_v13 = vadd.f32 %v625_v10, %v614_v12  ;;  %v616_v14 = vpop.f32.mrb[1].mxu0 }
 0x1bf   : > { %v628_v17 = vadd.f32 %v625_v10, %v616_v14 }
 0x1c0   : > { %vm629_vm2 = vcmp.gt.f32.partialorder %v627_v13, 0.0  ;;  %v631_v18 = vmul.f32 0.1, %v627_v13 }
 0x1c1   : > { %vm630_vm5 = vcmp.gt.f32.partialorder %v628_v17, 0.0  ;;  %v632_v19 = vmul.f32 0.1, %v628_v17 }
 0x1c2   : > { %v633_v20 = vsel %vm629_vm2, %v627_v13, %v631_v18  ;;  %vm1950_vm2 = vcmp.lt.s32.totalorder %v1613_v11, 17 }
 0x1c3   : > { %v634_v21 = vsel %vm630_vm5, %v628_v17, %v632_v19  ;;  %668 = vrot.lane.b32.xlu1 %v633_v20, %s1390_s24  ;;  %vm1948_vm5 = vcmp.lt.s32.totalorder %v1613_v11, 127 }
 0x1c4   : > { %v1229_v22 = vpack.i.bf16 %v634_v21, %v633_v20 }
 0x1c6   : > { %1230 = vrot.lane.b32.xlu0 %v1229_v22, %s1391_s26 }
 0x1c7   : > { %1235 = vrot.lane.b32.xlu1 %v1229_v22, %s1392_s14 }
 0x1ca   : > { %670 = vrot.lane.b32.xlu0 %v634_v21, %s1390_s24 }
 0x1cb   : > { %651 = vrot.lane.b32.xlu1 %v633_v20, %s1393_s6 }
 0x1ce   : > { %1240 = vrot.lane.b32.xlu0 %v1229_v22, %s1394_s7  ;;  %s1088_s7 = sshll.u32 %s1452_s22, 8  ;;  %s941_s22 = scalar_lea.sflag [#allocation4], %s1567_s16 }
 0x1cf   : > { %1245 = vrot.lane.b32.xlu1 %v1229_v22, %s1395_s15  ;;  %s255_s15 = scalar_lea.vmem [#allocation7], %s1043_s17 }
 0x1d2   : > { %653 = vrot.lane.b32.xlu0 %v634_v21, %s1393_s6 }
 0x1d3   : > { %842 = vrot.lane.b32.xlu1 %v633_v20, %s1396_s11 }
 0x1d6   : > { %1250 = vrot.lane.b32.xlu0 %v1229_v22, %s1398_s29  ;;  %s1859_s29 = scalar_lea.hbm %s1908_s5, %s1088_s7 }
 0x1d7   : > { %931 = vperm.xlu1 %1228, %v928_v24  }
 0x1da   : > { %844 = vrot.lane.b32.xlu0 %v634_v21, %s1396_s11  ;;  %s955_s11 = sshll.u32 %s255_s15, 4  ;;  %s1861_s11 = int_to_ptr.vmem [resolvable:$true] %s955_s11 }
 0x1db   : > { %s1313_s17 = scalar_lea.vmem %s1861_s11, 256  ;;  %p1320_p10 = scmp.lt.s32.totalorder %s1861_s11, %s1318_s28 }
 0x1dc   : > { %p1314_p4 = scmp.ne.s32.totalorder %s1861_s11, %s1313_s17  ;;  %p1321_p13 = scmp.lt.s32.totalorder %s1319_s23, %s1313_s17 }
 0x1de   : > { %p1315_p6 = pnand %p1314_p4, %p1522_p12  ;;  %p1322_p3 = por %p1321_p13, %p1320_p10 }
 0x1e0   : > { %p1316_p8 = pneg %p1315_p6 }
 0x1e2   : > { %p1323_p7 = pnand %p1322_p3, %p1316_p8 }
 0x235   : > { %v669_v25 = vpop.permute.xlu1 %668 }
 0x238   : > { %v1231_v26 = vpop.permute.xlu0 %1230 }
 0x239   : > { %v1233_v27 = vunpack.i.h.bf16 %v1231_v26  ;;  %v1232_v29 = vunpack.i.l.bf16 %v1231_v26  ;;  %v1236_v30 = vpop.permute.xlu1 %1235 }
 0x23a   : > { %v1238_v39 = vunpack.i.h.bf16 %v1236_v30  ;;  %v1237_v40 = vunpack.i.l.bf16 %v1236_v30 }
 0x23b   : > { %v664_v32 = vsel %vm327_vm3, %v1232_v29, %v1233_v27  ;;  %v665_v33 = vsel %vm327_vm3, %v1233_v27, %v1232_v29  ;;  %vm1949_vm3 = vmmov %vm1948_vm5 }
 0x23c   : > { %v671_v34 = vpop.permute.xlu0 %670  ;;  %v1107_v36 = vpack.c.bf16 %v634_v21, %v664_v32  ;;  %v1110_v37 = vpack.c.bf16 %v633_v20, %v665_v33  ;;  %v639_v47 = vsel %vm1950_vm2, %v1237_v40, %v1238_v39 }
 0x23d   : > { %v652_v38 = vpop.permute.xlu1 %651  ;;  %v673_v41 = vsel %vm1948_vm5, %v671_v34, %v669_v25  ;;  %v672_v46 = vsel %vm1949_vm3, %v669_v25, %v671_v34  ;;  %vm1951_vm5 = vmmov %vm1950_vm2  ;;  %vm1961_vm2 = vcmp.lt.s32.totalorder %v1613_v11, 111 }
 0x23e   : > { %1109 = vmatprep.subr.msk.bf16.mxu1 %vm1628_vm6, %v1107_v36  ;;  %v640_v48 = vsel %vm1951_vm5, %v1238_v39, %v1237_v40 }
 0x23f   : > { %1112 = vmatpush1.bf16.msk.msra.mxu1 %vm1638_vm8, %v1110_v37 }
 0x240   : > { %v1241_v42 = vpop.permute.xlu0 %1240  ;;  %1066 = vmatprep.subr.msk.mxu1 %vm1920_vm9, %v673_v41  ;;  %vm1953_vm9 = vmmov %vm1952_vm1 }
 0x241   : > { %v1243_v43 = vunpack.i.h.bf16 %v1241_v42  ;;  %v1242_v44 = vunpack.i.l.bf16 %v1241_v42  ;;  %v1246_v56 = vpop.permute.xlu1 %1245 }
 0x242   : > { %v1248_v58 = vunpack.i.h.bf16 %v1246_v56  ;;  %v1247_v59 = vunpack.i.l.bf16 %v1246_v56 }
 0x243   : > { %v647_v49 = vsel %vm1952_vm1, %v1242_v44, %v1243_v43  ;;  %v648_v51 = vsel %vm1953_vm9, %v1243_v43, %v1242_v44  ;;  %1067 = vmatpush1.msk.msra.mxu1 %vm265_vm13, %v672_v46  ;;  %vm1954_vm9 = vmpackc.low %vm1645_vm10, %vm1662_vm15  ;;  %vm1955_vm1 = vcmp.le.s32.totalorder %v1617_v15, 14  ;;  %vm1958_vm10 = vcmp.lt.s32.totalorder %v1613_v11, 112 }
 0x244   : > { %v1113_v53 = vpack.c.bf16 %v647_v49, %v639_v47  ;;  %v1116_v55 = vpack.c.bf16 %v648_v51, %v640_v48  ;;  %v654_v57 = vpop.permute.xlu0 %653  ;;  %1068 = vmatmul.mubr.msk.f32.vlgmr.msra.gmra.mrb[0].mxu1 %vm351_vm14, %v1063_v45  ;;  %vm1959_vm15 = vmmov %vm1958_vm10 }
 0x245   : > { %819 = vmatprep.mubr.f32.mxu1 %v1389_v6  ;;  %v655_v60 = vsel %vm311_vm0, %v652_v38, %v654_v57  ;;  %v656_v2 = vsel %vm311_vm0, %v654_v57, %v652_v38  ;;  %v843_v9 = vpop.permute.xlu1 %842  ;;  %vm1960_vm0 = vmpackc.low %vm1685_vm4, %vm1714_vm7 }
 0x246   : > { %1115 = vmatprep.subr.msk.bf16.mxu1 %vm1628_vm6, %v1113_v53  ;;  %vm1956_vm6 = vcmp.lt.s32.totalorder %v1613_v11, 113 }
 0x247   : > { %1118 = vmatpush1.bf16.msk.msra.mxu1 %vm1954_vm9, %v1116_v55  ;;  %v830_v31 = vsel %vm1956_vm6, %v1247_v59, %v1248_v58  ;;  %vm1957_vm3 = vmmov %vm1956_vm6 }
 0x248   : > { %v1251_v61 = vpop.permute.xlu0 %1250  ;;  %1072 = vmatprep.subr.msk.mxu1 %vm1955_vm1, %v655_v60  ;;  %v831_v35 = vsel %vm1957_vm3, %v1248_v58, %v1247_v59 }
 0x249   : > { %v1253_v62 = vunpack.i.h.bf16 %v1251_v61  ;;  %v1252_v63 = vunpack.i.l.bf16 %v1251_v61 }
 0x24b   : > { %v838_v3 = vsel %vm1958_vm10, %v1252_v63, %v1253_v62  ;;  %v839_v15 = vsel %vm1959_vm15, %v1253_v62, %v1252_v63  ;;  %1073 = vmatpush1.msk.msra.mxu1 %vm1703_vm12, %v656_v2  ;;  %vm1962_vm12 = vmmov %vm1961_vm2 }
 0x24c   : > { %v1119_v4 = vpack.c.bf16 %v839_v15, %v831_v35  ;;  %v1122_v5 = vpack.c.bf16 %v838_v3, %v830_v31  ;;  %v845_v8 = vpop.permute.xlu0 %844  ;;  %1074 = vmatmul.mubr.msk.f32.vlgmr.msra.gmra.mrb[0].mxu1 %vm351_vm14, %v659_v23 }
 0x24d   : > { %919 = vmatprep.mubr.f32.mxu1 %v1389_v6  ;;  %v847_v52 = vsel %vm1961_vm2, %v845_v8, %v843_v9  ;;  %v1075_v6 = vld [vmem:[%s1906_s3 + $0x10] sm:$0xff]  ;;  %v846_v50 = vsel %vm1962_vm12, %v843_v9, %v845_v8 }
 0x24e   : > { %1121 = vmatprep.subr.msk.bf16.mxu1 %vm1960_vm0, %v1119_v4 }
 0x24f   : > { %1124 = vmatpush1.bf16.msk.msra.mxu1 %vm1638_vm8, %v1122_v5 }
 0x250   : > { %1079 = vmatprep.subr.msk.mxu1 %vm1742_vm11, %v847_v52 }
 0x253   : > { %1080 = vmatpush1.msk.msra.mxu1 %vm265_vm13, %v846_v50 }
 0x254   : > { %1081 = vmatmul.mubr.msk.f32.vlgmr.msra.gmra.mrb[0].mxu1 %vm351_vm14, %v1075_v6 }
 0x256   : > { %v932_v54 = vpop.permute.xlu1 %931 }
 0x327   : > { %v921_v10 = vpop.f32.mrb[0].mxu1 }
 0x328   : > { %v934_v28 = vadd.f32 %v932_v54, %v921_v10  ;;  %v923_v12 = vpop.f32.mrb[1].mxu1 }
 0x329   : > { %v935_v7 = vadd.f32 %v932_v54, %v923_v12 }
 0x32a   : > { %v936_v13 = vadd.f32 %v934_v28, %v1581_v0 }
 0x32b   : > { %v937_v11 = vadd.f32 %v935_v7, %v1583_v1 }
 0x32c   : > { %938 = vst [vmem:[%s255_s15] sm:$0xff] %v936_v13 }
 0x32d   : > { %939 = vst [vmem:[%s255_s15 + $0x8] sm:$0xff] %v937_v11 }
 0x32e   : > { %1326 = shalt.err (!%p1323_p7)
}
 0x32f   : > { %s1327_s16 = scalar_lea.hbm %s1859_s29, 256  ;;  %s1331_s26 = scalar_lea.hbm %s1908_s5, 512 }
 0x330   : > { %p1328_p9 = scmp.ne.s32.totalorder %s1859_s29, %s1327_s16  ;;  %p1332_p0 = scmp.lt.u32.totalorder %s1859_s29, %s1908_s5 }
 0x331   : > { %p1333_p11 = scmp.lt.u32.totalorder %s1331_s26, %s1327_s16  ;;  %p1335_p4 = scmp.lt.u32.totalorder %s1327_s16, %s1859_s29 }
 0x332   : > { %p1329_p2 = pnand %p1328_p9, %p1522_p12 }
 0x333   : > { %p1334_p1 = por %p1333_p11, %p1332_p0 }
 0x334   : > { %p1330_p5 = pneg %p1329_p2 }
 0x335   : > { %p1336_p6 = por %p1335_p4, %p1334_p1 }
 0x337   : > { %p1337_p8 = pnand %p1336_p6, %p1330_p5 }
 0x339   : > { %1340 = shalt.err (!%p1337_p8)
}
 0x33a   : > { %1139 = dma.vmem_to_hbm [thread:$0]  (%p1522_p12), %s1861_s11, 256, %s1859_s29, %s941_s22  }
 0x33b PF: > { %s967_s7 = sand.u32 1, %s1371_s18   ;;  %p1963_p10 = scmp.ne.s32.totalorder %s1922_s25, 0 }
 0x33c   : > { %p1964_p13 = scmp.ge.s32.totalorder %s1383_s21, 2  ;;  %s968_s15 = scalar_lea.sflag [#allocation4], %s967_s7 }
 0x33e   : > { %p1150_p3 = pnand %p1964_p13, %p1963_p10 }
 0x340   : > { %1366 = dma.done.wait (!%p1150_p3), %s968_s15, 256  }
 0x341   : > { %1368 = vsyncadd (!%p1150_p3), %s968_s15, 4294967040  ;;  %p19_p7 = scmp.ge.s32.totalorder %s1487_s30, 4   ;;  %s1965_s18 = smov %s1375_s19 }
 0x342   : > { %s1966_s19 = smov %s1379_s20  ;;  %s1967_s20 = smov %s1518_s8 }
 0x343   : > { %s1968_s21 = smov %s1487_s30  ;;  %21 = sbr.rel (!%p19_p7) target bundleno = 6 (0x6), region = 93 }
 0x34a   :  { %973 = vsyncpa [#allocation3], 1 }
 0x34b   :  { %975 = vsyncpa [#allocation3 + $0x1], 1 }
 0x34c   :  { %976 = vsyncpa [#allocation6], 1 }
 0x34d   :  { %977 = vsyncpa [#allocation4], 1 }
 0x34e   :  { %979 = vsyncpa [#allocation4 + $0x1], 1 }

// kernel: tpu_custom_call.1
= control target key start
LH: loop header
LB: loop body
LE: loop exit
PB: predicated region body
PF: predicated region fallthrough
CT: control target
= control target key end

     0   :  { %10 = vsyncpa [#allocation3], 0  ;;  %s1903_s0 = inlined_call_operand.hbm [shape: f32[2,8,256], index: 0, kind: input, shape index: {}]   ;;  %s1904_s1 = inlined_call_operand.hbm [shape: f32[3,8,24], index: 1, kind: input, shape index: {}]   ;;  %s1905_s2 = inlined_call_operand.vmem [shape: f32[8,1], index: 2, kind: input, shape index: {}]   ;;  %s1906_s3 = inlined_call_operand.vmem [shape: f32[3,8,24], index: 3, kind: input, shape index: {}]   ;;  %s1907_s4 = inlined_call_operand.vmem [shape: f32[8,1], index: 4, kind: input, shape index: {}]   ;;  %s1908_s5 = inlined_call_operand.hbm [shape: f32[2,8,256], index: 5, kind: output, shape index: {}]  }
   0x1   :  { %12 = vsyncpa [#allocation3 + $0x1], 0 }
   0x2   :  { %13 = vsyncpa [#allocation6], 0 }
   0x3   :  { %14 = vsyncpa [#allocation4], 0 }
   0x4   :  { %16 = vsyncpa [#allocation4 + $0x1], 0  ;;  %s1431_s18 = smov 0   ;;  %s1433_s19 = smov 0  }
   0x5   :  { %s1435_s20 = smov 0   ;;  %s1437_s21 = smov 0  }
   0x6 LB: > { %s1452_s22 = sadd.s32 4294967295, %s1383_s21   ;;  %s1035_s23 = sadd.s32 4294967294, %s1383_s21   ;;  %s1383_s21 = sphi %s1437_s21, %s1968_s21   ;;  %s1379_s20 = sphi %s1435_s20, %s1967_s20   ;;  %s1375_s19 = sphi %s1433_s19, %s1966_s19   ;;  %s1371_s18 = sphi %s1431_s18, %s1965_s18  }
   0x7   : > { %p42_p0 = scmp.ne.s32.totalorder %s1375_s19, %s1371_s18  ;;  %p1909_p1 = scmp.eq.s32.totalorder %s1452_s22, 0 }
   0x8   : > { %p156_p3 = scmp.eq.s32.totalorder %s1035_s23, 1  ;;  %p1036_p5 = scmp.ge.s32.totalorder %s1383_s21, 1 }
   0x9   : > { %p1461_p4 = por %p1909_p1, %p42_p0  ;;  %p163_p7 = scmp.lt.s32.totalorder %s1383_s21, 3 }
   0xa   : > { %p1466_p6 = por %p156_p3, %p42_p0  ;;  %s1385_s27 = smov [#allocation5]  }
   0xb   : > { %s1921_s24 = scalar_select %p1461_p4, 1, 0 }
   0xc   : > { %s1922_s25 = scalar_select %p1466_p6, 1, 0 }
   0xd   : > { %p1471_p8 = pnand %p1036_p5, %p163_p7  ;;  %s175_s28 = sshll.u32 %s1385_s27, 4  ;;  %s1475_s28 = int_to_ptr.vmem [resolvable:$true] %s175_s28 }
   0xe   : > { %s1487_s30 = sadd.s32 1, %s1383_s21   ;;  %s29_s6 = sadd.s32 1, %s1379_s20 }
   0xf   : > { %s1923_s26 = scalar_select %p1471_p8, 1, 0 }
  0x10   : > { %p1141_p9 = pneg %p1471_p8  ;;  %s26_s7 = ssub.s32 %s1383_s21, %s1487_s30 }
  0x11   : > { %s1255_s10 = scalar_lea.hbm %s1904_s1, 384 }
  0x12   : > { %p1482_p11 = pnand %p1141_p9, %p1909_p1  ;;  %p1256_p12 = scmp.ne.s32.totalorder %s1904_s1, %s1255_s10 }
  0x13   : > { %p1262_p5 = scmp.lt.u32.totalorder %s1255_s10, %s1904_s1 }
  0x14   : > { %p1257_p13 = pneg %p1482_p11 }
  0x16   : > { %p1258_p0 = pnand %p1257_p13, %p1256_p12 }
  0x18   : > { %p1259_p3 = pneg %p1258_p0 }
  0x1a   : > { %p1264_p7 = pnand %p1262_p5, %p1259_p3 }
  0x1c   : > { %1267 = shalt.err (!%p1264_p7)
}
  0x1d   : > { %s1268_s15 = scalar_lea.vmem %s1475_s28, 384  ;;  %p1276_p2 = scmp.lt.s32.totalorder %s1475_s28, %s1475_s28 }
  0x1e   : > { %p1269_p9 = scmp.ne.s32.totalorder %s1475_s28, %s1268_s15  ;;  %p1277_p6 = scmp.lt.s32.totalorder %s1268_s15, %s1268_s15 }
  0x20   : > { %p1271_p10 = pnand %p1269_p9, %p1257_p13  ;;  %p1278_p4 = por %p1277_p6, %p1276_p2 }
  0x22   : > { %p1272_p1 = pneg %p1271_p10 }
  0x24   : > { %p1279_p8 = pnand %p1278_p4, %p1272_p1 }
  0x26   : > { %1282 = shalt.err (!%p1279_p8)
}
  0x27   : > { %s1386_s16 = smov 128   ;;  %s1387_s17 = smov 8  }
  0x28   : > { %1144 = dma.hbm_to_vmem [thread:$0]  (!%p1482_p11), %s1904_s1, 384, %s1475_s28, [#allocation6], %s1386_s16, %s1386_s16, %s1387_s17  }
  0x29   : > { %p27_p2 = scmp.eq.s32.totalorder %s26_s7, 0  ;;  %p36_p1 = scmp.ne.s32.totalorder %s1379_s20, %s1375_s19 }
  0x2a   : > { %p37_p4 = scmp.eq.s32.totalorder %s1383_s21, 0  ;;  %p1154_p6 = scmp.lt.s32.totalorder %s1383_s21, 2 }
  0x2b   : > { %s1518_s8 = scalar_select %p27_p2, %s1379_s20, %s29_s6  }
  0x2c   : > { %p38_p8 = por %p37_p4, %p36_p1  ;;  %p1925_p10 = scmp.eq.s32.totalorder %s1452_s22, 1 }
  0x2d   : > { %s198_s10 = sand.u32 1, %s1379_s20   ;;  %s1087_s11 = sshll.u32 %s1383_s21, 8 }
  0x2e   : > { %p1522_p12 = por %p1925_p10, %p36_p1  ;;  %s1039_s12 = sshll.u32 %s198_s10, 4 }
  0x2f   : > { %s1531_s14 = scalar_lea.hbm %s1903_s0, %s1087_s11  ;;  %s202_s28 = scalar_lea.vmem [#allocation2], %s1039_s12 }
  0x30   : > { %s210_s6 = sshll.u32 %s202_s28, 4  ;;  %p1533_p11 = pnand %p1154_p6, %p38_p8  ;;  %s1537_s6 = int_to_ptr.vmem [resolvable:$true] %s210_s6 }
  0x31   : > { %s199_s15 = scalar_lea.sflag [#allocation3], %s198_s10  ;;  %s1283_s16 = scalar_lea.hbm %s1531_s14, 256 }
  0x32   : > { %p1284_p13 = scmp.ne.s32.totalorder %s1531_s14, %s1283_s16  ;;  %p1285_p0 = pneg %p1533_p11 }
  0x33   : > { %s1288_s27 = scalar_lea.hbm %s1903_s0, 512  ;;  %p1289_p7 = scmp.lt.u32.totalorder %s1531_s14, %s1903_s0 }
  0x34   : > { %p1286_p3 = pnand %p1285_p0, %p1284_p13  ;;  %p1290_p9 = scmp.lt.u32.totalorder %s1288_s27, %s1283_s16 }
  0x35   : > { %p1292_p1 = scmp.lt.u32.totalorder %s1283_s16, %s1531_s14 }
  0x36   : > { %p1287_p5 = pneg %p1286_p3  ;;  %p1291_p2 = por %p1290_p9, %p1289_p7 }
  0x38   : > { %p1293_p4 = por %p1292_p1, %p1291_p2 }
  0x3a   : > { %p1294_p6 = pnand %p1293_p4, %p1287_p5 }
  0x3c   : > { %1297 = shalt.err (!%p1294_p6)
}
  0x3d   : > { %s1298_s10 = scalar_lea.vmem %s1537_s6, 256  ;;  %s1388_s29 = smov [#allocation2]  }
  0x3e   : > { %p1299_p8 = scmp.ne.s32.totalorder %s1537_s6, %s1298_s10  ;;  %s1303_s13 = sshll.u32 %s1388_s29, 4  ;;  %s1304_s13 = int_to_ptr.vmem [resolvable:$false] %s1303_s13 }
  0x3f   : > { %s1305_s28 = scalar_lea.vmem %s1304_s13, 512  ;;  %p1306_p3 = scmp.lt.s32.totalorder %s1537_s6, %s1304_s13 }
  0x40   : > { %p1301_p10 = pnand %p1299_p8, %p1285_p0  ;;  %p1307_p7 = scmp.lt.s32.totalorder %s1305_s28, %s1298_s10 }
  0x42   : > { %p1302_p13 = pneg %p1301_p10  ;;  %p1308_p9 = por %p1307_p7, %p1306_p3 }
  0x44   : > { %p1309_p2 = pnand %p1308_p9, %p1302_p13 }
  0x46   : > { %1312 = shalt.err (!%p1309_p2)
}
  0x47   : > { %1148 = dma.hbm_to_vmem [thread:$0]  (!%p1533_p11), %s1531_s14, 256, %s1537_s6, %s199_s15  }
  0x48   : > { %p1928_p5 = scmp.ne.s32.totalorder %s1923_s26, 0 }
  0x49   : > { %s1567_s16 = sand.u32 (!%p1928_p5), 1, %s1375_s19   ;;  %p1929_p0 = scmp.ne.s32.totalorder (!%p1928_p5), %s1921_s24, 0 }
  0x4a   : > { %219 = sbr.rel (%p1928_p5) target bundleno = 827 (0x33b), region = 40  ;;  %s1043_s17 = sshll.u32 (!%p1928_p5), %s1567_s16, 4 }
  0x4b   : > { %s222_s23 = scalar_lea.sflag (!%p1928_p5), [#allocation3], %s1567_s16  ;;  %s225_s27 = scalar_lea.vmem (!%p1928_p5), [#allocation2], %s1043_s17 }
  0x51   : > { %1358 = dma.done.wait (%p1929_p0), %s222_s23, 256  }
  0x52   : > { %1360 = vsyncadd (%p1929_p0), %s222_s23, 4294967040  ;;  %p1930_p11 = scmp.eq.s32.totalorder %s1452_s22, 0 }
  0x54   : > { %1362 = dma.done.wait (%p1930_p11), [#allocation6], 384   ;;  %p1931_p1 = pmov %p1930_p11 }
  0x55   : > { %v1581_v0 = vld [vmem:[%s225_s27] sm:$0xff]  ;;  %v1583_v1 = vld [vmem:[%s225_s27 + $0x8] sm:$0xff]  ;;  %v1389_v6 = vmov 0.0   ;;  %s1390_s24 = smov 127   ;;  %s1391_s26 = smov 1   ;;  %v1397_v8 = vmov 0   ;;  %v256_v10 = vlaneseq }
  0x56   : > { %1364 = vsyncadd (%p1931_p1), [#allocation6], 4294966912  ;;  %vm273_vm0 = vcmp.gt.f32.partialorder %v1581_v0, 0.0  ;;  %vm274_vm1 = vcmp.gt.f32.partialorder %v1583_v1, 0.0  ;;  %v275_v2 = vmul.f32 0.1, %v1581_v0  ;;  %419 = vmatprep.mubr.f32.mxu0 %v1389_v6  ;;  %745 = vmatprep.mubr.f32.mxu1 %v1389_v6 }
  0x57   : > { %v276_v3 = vmul.f32 0.1, %v1583_v1  ;;  %s1392_s14 = smov 17   ;;  %s1393_s6 = smov 15   ;;  %1228 = vset.pattern.permute.xlu1 %v1397_v8  ;;  %v621_v9 = vld [vmem:[%s1905_s2] sm:$0xff]  ;;  %1254 = vset.pattern.permute.xlu0 %v1397_v8  ;;  %v1613_v11 = vand.u32 127, %v256_v10 }
  0x58   : > { %v1590_v4 = vsel %vm273_vm0, %v1581_v0, %v275_v2  ;;  %s1394_s7 = smov 16   ;;  %s1395_s15 = smov 113   ;;  %vm1399_vm5 = vmmov 1   ;;  %vm351_vm14 = vcmask 195584   ;;  %v350_v40 = vld [vmem:[#allocation5 + $0x8] sm:$0xff]  ;;  %v322_v59 = vld [vmem:[#allocation5] sm:$0xff] }
  0x59   : > { %v278_v5 = vsel %vm274_vm1, %v1583_v1, %v276_v3  ;;  %s1396_s11 = smov 111   ;;  %s1398_s29 = smov 112   ;;  %v258_v12 = vadd.s32 128, %v1613_v11  ;;  %v259_v14 = vand.u32 255, %v1613_v11  ;;  %vm327_vm3 = vcmp.lt.s32.totalorder %v1613_v11, 1  ;;  %v659_v23 = vld [vmem:[%s1906_s3] sm:$0xff] }
  0x5a   : > { %v1203_v7 = vpack.i.bf16 %v278_v5, %v1590_v4  ;;  %338 = vrot.lane.b32.xlu1 %v278_v5, %s1390_s24  ;;  %vm1914_vm7 = vcmp.lt.s32.totalorder %v1613_v11, 127  ;;  %vm1913_vm11 = vcmp.lt.s32.totalorder %v1613_v11, 17  ;;  %vm1912_vm12 = vcmp.lt.s32.totalorder %v1613_v11, 16  ;;  %s1400_s13 = smov [#allocation7]  }
  0x5b   : > { %v260_v13 = vand.u32 255, %v258_v12  ;;  %v1619_v16 = vand.u32 15, %v259_v14  ;;  %vm1645_vm10 = vcmp.ge.s32.totalorder %v259_v14, 16  ;;  %vm311_vm0 = vcmp.lt.s32.totalorder %v1613_v11, 15  ;;  %s1317_s28 = sshll.u32 %s1400_s13, 4  ;;  %s1318_s28 = int_to_ptr.vmem [resolvable:$false] %s1317_s28 }
  0x5c   : > { %1204 = vrot.lane.b32.xlu0 %v1203_v7, %s1391_s26  ;;  %s1319_s23 = scalar_lea.vmem %s1318_s28, 512 }
  0x5d   : > { %v1617_v15 = vand.u32 15, %v260_v13  ;;  %vm263_vm4 = vcmp.ge.s32.totalorder %v1619_v16, 1  ;;  %vm265_vm13 = vcmp.le.s32.totalorder %v1619_v16, 14 }
  0x5e   : > { %1209 = vrot.lane.b32.xlu1 %v1203_v7, %s1392_s14  ;;  %vm1638_vm8 = vmpackc.low %vm1399_vm5, %vm263_vm4 }
  0x5f   : > { %vm264_vm2 = vcmp.ge.s32.totalorder %v1617_v15, 1  ;;  %vm1920_vm9 = vcmp.le.s32.totalorder %v1617_v15, 14  ;;  %vm1662_vm15 = vmand %vm263_vm4, %vm1645_vm10  ;;  %vm1685_vm4 = vcmp.lt.s32.totalorder %v260_v13, 240 }
  0x60   : > { %336 = vrot.lane.b32.xlu0 %v1590_v4, %s1390_s24  ;;  %vm1628_vm6 = vmpackc.low %vm1399_vm5, %vm264_vm2  ;;  %vm1918_vm5 = vcmp.lt.s32.totalorder %v1613_v11, 113 }
  0x61   : > { %vm1915_vm1 = vmpackc.low %vm1645_vm10, %vm1662_vm15 }
  0x62   : > { %307 = vrot.lane.b32.xlu1 %v1590_v4, %s1393_s6 }
  0x64   : > { %1214 = vrot.lane.b32.xlu0 %v1203_v7, %s1394_s7 }
  0x66   : > { %1219 = vrot.lane.b32.xlu1 %v1203_v7, %s1395_s15 }
  0x68   : > { %309 = vrot.lane.b32.xlu0 %v278_v5, %s1393_s6 }
  0x6a   : > { %528 = vrot.lane.b32.xlu1 %v1590_v4, %s1396_s11 }
  0x6c   : > { %1224 = vrot.lane.b32.xlu0 %v1203_v7, %s1398_s29 }
  0x6e   : > { %624 = vperm.xlu1 %1228, %v621_v9   ;;  %v544_v9 = vld [vmem:[#allocation5 + $0x10] sm:$0xff] }
  0x70   : > { %530 = vrot.lane.b32.xlu0 %v278_v5, %s1396_s11 }
  0xcc   : > { %v339_v17 = vpop.permute.xlu1 %338 }
  0xce   : > { %v1205_v18 = vpop.permute.xlu0 %1204 }
  0xcf   : > { %v1207_v19 = vunpack.i.h.bf16 %v1205_v18  ;;  %v1206_v20 = vunpack.i.l.bf16 %v1205_v18 }
  0xd0   : > { %v1210_v21 = vpop.permute.xlu1 %1209 }
  0xd1   : > { %v328_v22 = vsel %vm327_vm3, %v1206_v20, %v1207_v19  ;;  %v329_v24 = vsel %vm327_vm3, %v1207_v19, %v1206_v20  ;;  %v1212_v29 = vunpack.i.h.bf16 %v1210_v21  ;;  %v1211_v30 = vunpack.i.l.bf16 %v1210_v21 }
  0xd2   : > { %v337_v25 = vpop.permute.xlu0 %336  ;;  %v1089_v26 = vpack.c.bf16 %v278_v5, %v328_v22  ;;  %v1092_v27 = vpack.c.bf16 %v1590_v4, %v329_v24  ;;  %v928_v24 = vld [vmem:[%s1907_s4] sm:$0xff] }
  0xd3   : > { %v342_v33 = vsel %vm1914_vm7, %v339_v17, %v337_v25  ;;  %v284_v36 = vsel %vm1913_vm11, %v1211_v30, %v1212_v29  ;;  %v285_v37 = vsel %vm1913_vm11, %v1212_v29, %v1211_v30  ;;  %v341_v41 = vsel %vm1914_vm7, %v337_v25, %v339_v17  ;;  %vm1714_vm7 = vmand %vm264_vm2, %vm1685_vm4 }
  0xd4   : > { %1091 = vmatprep.subr.msk.bf16.mxu0 %vm1628_vm6, %v1089_v26  ;;  %v308_v32 = vpop.permute.xlu1 %307  ;;  %vm1916_vm11 = vcmp.lt.s32.totalorder %v1613_v11, 112  ;;  %vm1917_vm2 = vmpackc.low %vm1685_vm4, %vm1714_vm7 }
  0xd5   : > { %1094 = vmatpush1.bf16.msk.msra.mxu0 %vm1638_vm8, %v1092_v27 }
  0xd6   : > { %v1215_v34 = vpop.permute.xlu0 %1214  ;;  %1048 = vmatprep.subr.msk.mxu0 %vm1920_vm9, %v342_v33 }
  0xd7   : > { %v1217_v38 = vunpack.i.h.bf16 %v1215_v34  ;;  %v1216_v39 = vunpack.i.l.bf16 %v1215_v34 }
  0xd8   : > { %v1220_v42 = vpop.permute.xlu1 %1219 }
  0xd9   : > { %v299_v43 = vsel %vm1912_vm12, %v1216_v39, %v1217_v38  ;;  %v300_v44 = vsel %vm1912_vm12, %v1217_v38, %v1216_v39  ;;  %1049 = vmatpush1.msk.msra.mxu0 %vm265_vm13, %v341_v41  ;;  %v1222_v48 = vunpack.i.h.bf16 %v1220_v42  ;;  %v1221_v49 = vunpack.i.l.bf16 %v1220_v42  ;;  %vm1703_vm12 = vmand %vm265_vm13, %vm1645_vm10 }
  0xda   : > { %v1095_v45 = vpack.c.bf16 %v299_v43, %v284_v36  ;;  %v1098_v46 = vpack.c.bf16 %v300_v44, %v285_v37  ;;  %v310_v47 = vpop.permute.xlu0 %309  ;;  %1050 = vmatmul.mubr.msk.f32.vlgmr.msra.gmra.mrb[0].mxu0 %vm351_vm14, %v350_v40 }
  0xdb   : > { %493 = vmatprep.mubr.f32.mxu0 %v1389_v6  ;;  %v312_v51 = vsel %vm311_vm0, %v308_v32, %v310_v47  ;;  %v505_v55 = vsel %vm1918_vm5, %v1221_v49, %v1222_v48  ;;  %v506_v56 = vsel %vm1918_vm5, %v1222_v48, %v1221_v49  ;;  %v313_v60 = vsel %vm311_vm0, %v310_v47, %v308_v32 }
  0xdc   : > { %1097 = vmatprep.subr.msk.bf16.mxu0 %vm1628_vm6, %v1095_v45  ;;  %v529_v61 = vpop.permute.xlu1 %528  ;;  %v1063_v45 = vld [vmem:[%s1906_s3 + $0x8] sm:$0xff] }
  0xdd   : > { %1100 = vmatpush1.bf16.msk.msra.mxu0 %vm1915_vm1, %v1098_v46  ;;  %vm1919_vm1 = vcmp.lt.s32.totalorder %v1613_v11, 111 }
  0xde   : > { %v1225_v53 = vpop.permute.xlu0 %1224  ;;  %1054 = vmatprep.subr.msk.mxu0 %vm1920_vm9, %v312_v51 }
  0xdf   : > { %v1227_v57 = vunpack.i.h.bf16 %v1225_v53  ;;  %v1226_v58 = vunpack.i.l.bf16 %v1225_v53 }
  0xe1   : > { %v520_v62 = vsel %vm1916_vm11, %v1226_v58, %v1227_v57  ;;  %v521_v63 = vsel %vm1916_vm11, %v1227_v57, %v1226_v58  ;;  %1055 = vmatpush1.msk.msra.mxu0 %vm1703_vm12, %v313_v60  ;;  %vm1742_vm11 = vmand %vm1920_vm9, %vm1685_vm4 }
  0xe2   : > { %v1101_v2 = vpack.c.bf16 %v521_v63, %v506_v56  ;;  %v1104_v3 = vpack.c.bf16 %v520_v62, %v505_v55  ;;  %1056 = vmatmul.mubr.msk.f32.vlgmr.msra.gmra.mrb[0].mxu0 %vm351_vm14, %v322_v59  ;;  %v531_v4 = vpop.permute.xlu0 %530 }
  0xe3   : > { %v534_v5 = vsel %vm1919_vm1, %v531_v4, %v529_v61  ;;  %612 = vmatprep.mubr.f32.mxu0 %v1389_v6  ;;  %v533_v8 = vsel %vm1919_vm1, %v529_v61, %v531_v4  ;;  %vm1952_vm1 = vcmp.lt.s32.totalorder %v1613_v11, 16 }
  0xe4   : > { %1103 = vmatprep.subr.msk.bf16.mxu0 %vm1917_vm2, %v1101_v2 }
  0xe5   : > { %1106 = vmatpush1.bf16.msk.msra.mxu0 %vm1638_vm8, %v1104_v3 }
  0xe6   : > { %1060 = vmatprep.subr.msk.mxu0 %vm1742_vm11, %v534_v5 }
  0xe9   : > { %1061 = vmatpush1.msk.msra.mxu0 %vm265_vm13, %v533_v8 }
  0xea   : > { %1062 = vmatmul.mubr.msk.f32.vlgmr.msra.gmra.mrb[0].mxu0 %vm351_vm14, %v544_v9 }
  0xed   : > { %v625_v10 = vpop.permute.xlu1 %624 }
 0x1bd   : > { %v614_v12 = vpop.f32.mrb[0].mxu0 }
 0x1be   : > { %v627_v13 = vadd.f32 %v625_v10, %v614_v12  ;;  %v616_v14 = vpop.f32.mrb[1].mxu0 }
 0x1bf   : > { %v628_v17 = vadd.f32 %v625_v10, %v616_v14 }
 0x1c0   : > { %vm629_vm2 = vcmp.gt.f32.partialorder %v627_v13, 0.0  ;;  %v631_v18 = vmul.f32 0.1, %v627_v13 }
 0x1c1   : > { %vm630_vm5 = vcmp.gt.f32.partialorder %v628_v17, 0.0  ;;  %v632_v19 = vmul.f32 0.1, %v628_v17 }
 0x1c2   : > { %v633_v20 = vsel %vm629_vm2, %v627_v13, %v631_v18  ;;  %vm1950_vm2 = vcmp.lt.s32.totalorder %v1613_v11, 17 }
 0x1c3   : > { %v634_v21 = vsel %vm630_vm5, %v628_v17, %v632_v19  ;;  %668 = vrot.lane.b32.xlu1 %v633_v20, %s1390_s24  ;;  %vm1948_vm5 = vcmp.lt.s32.totalorder %v1613_v11, 127 }
 0x1c4   : > { %v1229_v22 = vpack.i.bf16 %v634_v21, %v633_v20 }
 0x1c6   : > { %1230 = vrot.lane.b32.xlu0 %v1229_v22, %s1391_s26 }
 0x1c7   : > { %1235 = vrot.lane.b32.xlu1 %v1229_v22, %s1392_s14 }
 0x1ca   : > { %670 = vrot.lane.b32.xlu0 %v634_v21, %s1390_s24 }
 0x1cb   : > { %651 = vrot.lane.b32.xlu1 %v633_v20, %s1393_s6 }
 0x1ce   : > { %1240 = vrot.lane.b32.xlu0 %v1229_v22, %s1394_s7  ;;  %s1088_s7 = sshll.u32 %s1452_s22, 8  ;;  %s941_s22 = scalar_lea.sflag [#allocation4], %s1567_s16 }
 0x1cf   : > { %1245 = vrot.lane.b32.xlu1 %v1229_v22, %s1395_s15  ;;  %s255_s15 = scalar_lea.vmem [#allocation7], %s1043_s17 }
 0x1d2   : > { %653 = vrot.lane.b32.xlu0 %v634_v21, %s1393_s6 }
 0x1d3   : > { %842 = vrot.lane.b32.xlu1 %v633_v20, %s1396_s11 }
 0x1d6   : > { %1250 = vrot.lane.b32.xlu0 %v1229_v22, %s1398_s29  ;;  %s1859_s29 = scalar_lea.hbm %s1908_s5, %s1088_s7 }
 0x1d7   : > { %931 = vperm.xlu1 %1228, %v928_v24  }
 0x1da   : > { %844 = vrot.lane.b32.xlu0 %v634_v21, %s1396_s11  ;;  %s955_s11 = sshll.u32 %s255_s15, 4  ;;  %s1861_s11 = int_to_ptr.vmem [resolvable:$true] %s955_s11 }
 0x1db   : > { %s1313_s17 = scalar_lea.vmem %s1861_s11, 256  ;;  %p1320_p10 = scmp.lt.s32.totalorder %s1861_s11, %s1318_s28 }
 0x1dc   : > { %p1314_p4 = scmp.ne.s32.totalorder %s1861_s11, %s1313_s17  ;;  %p1321_p13 = scmp.lt.s32.totalorder %s1319_s23, %s1313_s17 }
 0x1de   : > { %p1315_p6 = pnand %p1314_p4, %p1522_p12  ;;  %p1322_p3 = por %p1321_p13, %p1320_p10 }
 0x1e0   : > { %p1316_p8 = pneg %p1315_p6 }
 0x1e2   : > { %p1323_p7 = pnand %p1322_p3, %p1316_p8 }
 0x235   : > { %v669_v25 = vpop.permute.xlu1 %668 }
 0x238   : > { %v1231_v26 = vpop.permute.xlu0 %1230 }
 0x239   : > { %v1233_v27 = vunpack.i.h.bf16 %v1231_v26  ;;  %v1232_v29 = vunpack.i.l.bf16 %v1231_v26  ;;  %v1236_v30 = vpop.permute.xlu1 %1235 }
 0x23a   : > { %v1238_v39 = vunpack.i.h.bf16 %v1236_v30  ;;  %v1237_v40 = vunpack.i.l.bf16 %v1236_v30 }
 0x23b   : > { %v664_v32 = vsel %vm327_vm3, %v1232_v29, %v1233_v27  ;;  %v665_v33 = vsel %vm327_vm3, %v1233_v27, %v1232_v29  ;;  %vm1949_vm3 = vmmov %vm1948_vm5 }
 0x23c   : > { %v671_v34 = vpop.permute.xlu0 %670  ;;  %v1107_v36 = vpack.c.bf16 %v634_v21, %v664_v32  ;;  %v1110_v37 = vpack.c.bf16 %v633_v20, %v665_v33  ;;  %v639_v47 = vsel %vm1950_vm2, %v1237_v40, %v1238_v39 }
 0x23d   : > { %v652_v38 = vpop.permute.xlu1 %651  ;;  %v673_v41 = vsel %vm1948_vm5, %v671_v34, %v669_v25  ;;  %v672_v46 = vsel %vm1949_vm3, %v669_v25, %v671_v34  ;;  %vm1951_vm5 = vmmov %vm1950_vm2  ;;  %vm1961_vm2 = vcmp.lt.s32.totalorder %v1613_v11, 111 }
 0x23e   : > { %1109 = vmatprep.subr.msk.bf16.mxu1 %vm1628_vm6, %v1107_v36  ;;  %v640_v48 = vsel %vm1951_vm5, %v1238_v39, %v1237_v40 }
 0x23f   : > { %1112 = vmatpush1.bf16.msk.msra.mxu1 %vm1638_vm8, %v1110_v37 }
 0x240   : > { %v1241_v42 = vpop.permute.xlu0 %1240  ;;  %1066 = vmatprep.subr.msk.mxu1 %vm1920_vm9, %v673_v41  ;;  %vm1953_vm9 = vmmov %vm1952_vm1 }
 0x241   : > { %v1243_v43 = vunpack.i.h.bf16 %v1241_v42  ;;  %v1242_v44 = vunpack.i.l.bf16 %v1241_v42  ;;  %v1246_v56 = vpop.permute.xlu1 %1245 }
 0x242   : > { %v1248_v58 = vunpack.i.h.bf16 %v1246_v56  ;;  %v1247_v59 = vunpack.i.l.bf16 %v1246_v56 }
 0x243   : > { %v647_v49 = vsel %vm1952_vm1, %v1242_v44, %v1243_v43  ;;  %v648_v51 = vsel %vm1953_vm9, %v1243_v43, %v1242_v44  ;;  %1067 = vmatpush1.msk.msra.mxu1 %vm265_vm13, %v672_v46  ;;  %vm1954_vm9 = vmpackc.low %vm1645_vm10, %vm1662_vm15  ;;  %vm1955_vm1 = vcmp.le.s32.totalorder %v1617_v15, 14  ;;  %vm1958_vm10 = vcmp.lt.s32.totalorder %v1613_v11, 112 }
 0x244   : > { %v1113_v53 = vpack.c.bf16 %v647_v49, %v639_v47  ;;  %v1116_v55 = vpack.c.bf16 %v648_v51, %v640_v48  ;;  %v654_v57 = vpop.permute.xlu0 %653  ;;  %1068 = vmatmul.mubr.msk.f32.vlgmr.msra.gmra.mrb[0].mxu1 %vm351_vm14, %v1063_v45  ;;  %vm1959_vm15 = vmmov %vm1958_vm10 }
 0x245   : > { %819 = vmatprep.mubr.f32.mxu1 %v1389_v6  ;;  %v655_v60 = vsel %vm311_vm0, %v652_v38, %v654_v57  ;;  %v656_v2 = vsel %vm311_vm0, %v654_v57, %v652_v38  ;;  %v843_v9 = vpop.permute.xlu1 %842  ;;  %vm1960_vm0 = vmpackc.low %vm1685_vm4, %vm1714_vm7 }
 0x246   : > { %1115 = vmatprep.subr.msk.bf16.mxu1 %vm1628_vm6, %v1113_v53  ;;  %vm1956_vm6 = vcmp.lt.s32.totalorder %v1613_v11, 113 }
 0x247   : > { %1118 = vmatpush1.bf16.msk.msra.mxu1 %vm1954_vm9, %v1116_v55  ;;  %v830_v31 = vsel %vm1956_vm6, %v1247_v59, %v1248_v58  ;;  %vm1957_vm3 = vmmov %vm1956_vm6 }
 0x248   : > { %v1251_v61 = vpop.permute.xlu0 %1250  ;;  %1072 = vmatprep.subr.msk.mxu1 %vm1955_vm1, %v655_v60  ;;  %v831_v35 = vsel %vm1957_vm3, %v1248_v58, %v1247_v59 }
 0x249   : > { %v1253_v62 = vunpack.i.h.bf16 %v1251_v61  ;;  %v1252_v63 = vunpack.i.l.bf16 %v1251_v61 }
 0x24b   : > { %v838_v3 = vsel %vm1958_vm10, %v1252_v63, %v1253_v62  ;;  %v839_v15 = vsel %vm1959_vm15, %v1253_v62, %v1252_v63  ;;  %1073 = vmatpush1.msk.msra.mxu1 %vm1703_vm12, %v656_v2  ;;  %vm1962_vm12 = vmmov %vm1961_vm2 }
 0x24c   : > { %v1119_v4 = vpack.c.bf16 %v839_v15, %v831_v35  ;;  %v1122_v5 = vpack.c.bf16 %v838_v3, %v830_v31  ;;  %v845_v8 = vpop.permute.xlu0 %844  ;;  %1074 = vmatmul.mubr.msk.f32.vlgmr.msra.gmra.mrb[0].mxu1 %vm351_vm14, %v659_v23 }
 0x24d   : > { %919 = vmatprep.mubr.f32.mxu1 %v1389_v6  ;;  %v847_v52 = vsel %vm1961_vm2, %v845_v8, %v843_v9  ;;  %v1075_v6 = vld [vmem:[%s1906_s3 + $0x10] sm:$0xff]  ;;  %v846_v50 = vsel %vm1962_vm12, %v843_v9, %v845_v8 }
 0x24e   : > { %1121 = vmatprep.subr.msk.bf16.mxu1 %vm1960_vm0, %v1119_v4 }
 0x24f   : > { %1124 = vmatpush1.bf16.msk.msra.mxu1 %vm1638_vm8, %v1122_v5 }
 0x250   : > { %1079 = vmatprep.subr.msk.mxu1 %vm1742_vm11, %v847_v52 }
 0x253   : > { %1080 = vmatpush1.msk.msra.mxu1 %vm265_vm13, %v846_v50 }
 0x254   : > { %1081 = vmatmul.mubr.msk.f32.vlgmr.msra.gmra.mrb[0].mxu1 %vm351_vm14, %v1075_v6 }
 0x256   : > { %v932_v54 = vpop.permute.xlu1 %931 }
 0x327   : > { %v921_v10 = vpop.f32.mrb[0].mxu1 }
 0x328   : > { %v934_v28 = vadd.f32 %v932_v54, %v921_v10  ;;  %v923_v12 = vpop.f32.mrb[1].mxu1 }
 0x329   : > { %v935_v7 = vadd.f32 %v932_v54, %v923_v12 }
 0x32a   : > { %v936_v13 = vadd.f32 %v934_v28, %v1581_v0 }
 0x32b   : > { %v937_v11 = vadd.f32 %v935_v7, %v1583_v1 }
 0x32c   : > { %938 = vst [vmem:[%s255_s15] sm:$0xff] %v936_v13 }
 0x32d   : > { %939 = vst [vmem:[%s255_s15 + $0x8] sm:$0xff] %v937_v11 }
 0x32e   : > { %1326 = shalt.err (!%p1323_p7)
}
 0x32f   : > { %s1327_s16 = scalar_lea.hbm %s1859_s29, 256  ;;  %s1331_s26 = scalar_lea.hbm %s1908_s5, 512 }
 0x330   : > { %p1328_p9 = scmp.ne.s32.totalorder %s1859_s29, %s1327_s16  ;;  %p1332_p0 = scmp.lt.u32.totalorder %s1859_s29, %s1908_s5 }
 0x331   : > { %p1333_p11 = scmp.lt.u32.totalorder %s1331_s26, %s1327_s16  ;;  %p1335_p4 = scmp.lt.u32.totalorder %s1327_s16, %s1859_s29 }
 0x332   : > { %p1329_p2 = pnand %p1328_p9, %p1522_p12 }
 0x333   : > { %p1334_p1 = por %p1333_p11, %p1332_p0 }
 0x334   : > { %p1330_p5 = pneg %p1329_p2 }
 0x335   : > { %p1336_p6 = por %p1335_p4, %p1334_p1 }
 0x337   : > { %p1337_p8 = pnand %p1336_p6, %p1330_p5 }
 0x339   : > { %1340 = shalt.err (!%p1337_p8)
}
 0x33a   : > { %1139 = dma.vmem_to_hbm [thread:$0]  (%p1522_p12), %s1861_s11, 256, %s1859_s29, %s941_s22  }
 0x33b PF: > { %s967_s7 = sand.u32 1, %s1371_s18   ;;  %p1963_p10 = scmp.ne.s32.totalorder %s1922_s25, 0 }
 0x33c   : > { %p1964_p13 = scmp.ge.s32.totalorder %s1383_s21, 2  ;;  %s968_s15 = scalar_lea.sflag [#allocation4], %s967_s7 }
 0x33e   : > { %p1150_p3 = pnand %p1964_p13, %p1963_p10 }
 0x340   : > { %1366 = dma.done.wait (!%p1150_p3), %s968_s15, 256  }
 0x341   : > { %1368 = vsyncadd (!%p1150_p3), %s968_s15, 4294967040  ;;  %p19_p7 = scmp.ge.s32.totalorder %s1487_s30, 4   ;;  %s1965_s18 = smov %s1375_s19 }
 0x342   : > { %s1966_s19 = smov %s1379_s20  ;;  %s1967_s20 = smov %s1518_s8 }
 0x343   : > { %s1968_s21 = smov %s1487_s30  ;;  %21 = sbr.rel (!%p19_p7) target bundleno = 6 (0x6), region = 93 }
 0x34a   :  { %973 = vsyncpa [#allocation3], 1 }
 0x34b   :  { %975 = vsyncpa [#allocation3 + $0x1], 1 }
 0x34c   :  { %976 = vsyncpa [#allocation6], 1 }
 0x34d   :  { %977 = vsyncpa [#allocation4], 1 }
 0x34e   :  { %979 = vsyncpa [#allocation4 + $0x1], 1 }

</bundles_post_ra>
